<compile_context>
chip_gen: v5e
topology: v5e:2x2
jax: 0.10.0
libtpu: 0.0.40
codegen_flags: <defaults>
</compile_context>

<pallas_src>
import functools

import jax
import jax.numpy as jnp
from jax import lax
from jax.experimental import pallas as pl
from jax.experimental.pallas import tpu as pltpu


def _round_up(x, m):
    return ((x + m - 1) // m) * m


# ---------------------------------------------------------------------------
# Kernel 1: sequential LSTM recurrence. Only the recurrent matmul h @ W_hh is
# inside the serial loop; the input contribution (x @ W_ih + b) is precomputed.
# Gate layout is padded so each gate occupies a lane-aligned Hp-wide slice.
# ---------------------------------------------------------------------------
def _lstm_recurrence_kernel(gx_ref, h0_ref, w_hh_ref, h_out_ref,
                            h_sc, c_sc, *, hp, tc_steps):
    # grid = (num_b_tiles [parallel], num_t_chunks [arbitrary / sequential])
    @pl.when(pl.program_id(1) == 0)
    def _():
        h_sc[...] = h0_ref[...]
        c_sc[...] = jnp.zeros_like(c_sc)

    w_hh = w_hh_ref[...]                       # (Hp, 4Hp), resident

    def step(s, carry):
        h, c = carry
        gates = gx_ref[s] + jnp.dot(h, w_hh,
                                    preferred_element_type=jnp.float32)
        i_g = jax.nn.sigmoid(gates[:, 0 * hp:1 * hp])
        f_g = jax.nn.sigmoid(gates[:, 1 * hp:2 * hp])
        g_g = jnp.tanh(gates[:, 2 * hp:3 * hp])
        o_g = jax.nn.sigmoid(gates[:, 3 * hp:4 * hp])
        c_new = f_g * c + i_g * g_g
        h_new = o_g * jnp.tanh(c_new)
        h_out_ref[s] = h_new                   # lane-dense (B_tile, Hp) store
        return (h_new, c_new)

    # Carry h/c in vregs across the Tc inner steps (no VMEM round-trips).
    h, c = lax.fori_loop(0, tc_steps, step, (h_sc[...], c_sc[...]),
                         unroll=True)
    h_sc[...] = h
    c_sc[...] = c


# ---------------------------------------------------------------------------
# Kernel 2: fully parallel output projection + running argmax over V tiles.
# grid = (row_tiles [parallel], V_tiles [arbitrary, argmax accumulation]).
# ---------------------------------------------------------------------------
def _proj_argmax_kernel(h_ref, w_ref, b_ref, logits_ref, pred_ref,
                        maxv_sc, argm_sc, *, v_real, tv):
    v = pl.program_id(1)
    logits = (jnp.dot(h_ref[...], w_ref[...],
                      preferred_element_type=jnp.float32)
              + b_ref[...])                    # (tm, tv)
    logits_ref[...] = logits

    # Running argmax (first-index tie-break, padded columns masked out).
    col = lax.broadcasted_iota(jnp.int32, logits.shape, 1) + v * tv
    neg = jnp.finfo(jnp.float32).min
    masked = jnp.where(col < v_real, logits, neg)
    tile_max = jnp.max(masked, axis=-1, keepdims=True)          # (tm, 1)
    big = jnp.iinfo(jnp.int32).max
    tile_arg = jnp.min(jnp.where(masked == tile_max, col, big),
                       axis=-1, keepdims=True)                   # (tm, 1)

    @pl.when(v == 0)
    def _():
        maxv_sc[...] = tile_max
        argm_sc[...] = tile_arg

    @pl.when(v > 0)
    def _():
        better = tile_max > maxv_sc[...]       # strict > keeps earliest index
        argm_sc[...] = jnp.where(better, tile_arg, argm_sc[...])
        maxv_sc[...] = jnp.maximum(maxv_sc[...], tile_max)

    pred_ref[...] = argm_sc[...]


# ---------------------------------------------------------------------------
# Wrapper
# ---------------------------------------------------------------------------
def elmo_decoder_forward(inputs, targets, params, *, t_chunk=8, v_tile=512):
    """inputs: (B, H) f32 initial hidden state; targets: (B, T) int32 ids."""
    emb = params["embedding"]          # (V, I)
    w_ih_t = params["w_ih_t"]          # (I, 4H)   gate order [i, f, g, o]
    w_hh_t = params["w_hh_t"]          # (H, 4H)
    b = params["b"]                    # (1, 4H)   b_ih + b_hh
    w_out_t = params["w_out_t"]        # (H, V)
    b_out = params["b_out"]            # (1, V)

    B, H = inputs.shape
    T = targets.shape[1]
    V = emb.shape[0]

    # ---- glue (plain JAX): teacher-forced input tokens + embedding --------
    #   step 0: BOS token id 1; step t>0: targets[:, t-1]
    bos = jnp.full((B, 1), 1, dtype=targets.dtype)
    in_tokens = jnp.concatenate([bos, targets[:, :-1]], axis=1)      # (B, T)
    x_emb = jnp.take(emb, in_tokens, axis=0).astype(jnp.float32)     # (B, T, I)

    # ---- hoisted, time-parallel input projection (one big matmul) ---------
    gates_x = jnp.einsum("bti,ig->btg", x_emb, w_ih_t) + b           # (B, T, 4H)
    gates_x = jnp.transpose(gates_x, (1, 0, 2))                      # (T, B, 4H)

    # ---- pad to TPU-friendly shapes ---------------------------------------
    Hp = _round_up(H, 128)             # per-gate width -> lane aligned
    Bp = _round_up(B, 8)               # sublane aligned
    B_TILE = 8                         # batch tile (parallel axis; v7x megacore)
    Tc = min(t_chunk, T)               # timesteps per grid step (inner loop)
    Tp = _round_up(T, Tc)

    # gates_x: scatter each gate's H real columns into a Hp-wide slot.
    g_split = jnp.split(gates_x, 4, axis=-1)                         # 4 x (T,B,H)
    gx_pad = jnp.concatenate(
        [jnp.pad(g, ((0, Tp - T), (0, Bp - B), (0, Hp - H))) for g in g_split],
        axis=-1)                                                     # (Tp,Bp,4Hp)

    w_split = jnp.split(w_hh_t, 4, axis=-1)                          # 4 x (H,H)
    w_hh_pad = jnp.concatenate(
        [jnp.pad(w, ((0, Hp - H), (0, Hp - H))) for w in w_split],
        axis=-1)                                                     # (Hp, 4Hp)

    h0_pad = jnp.pad(inputs.astype(jnp.float32),
                     ((0, Bp - B), (0, Hp - H)))                     # (Bp, Hp)

    num_b = Bp // B_TILE
    num_t = Tp // Tc

    # ---- pallas call 1: sequential recurrence, emits hidden states --------
    lstm_kernel = functools.partial(_lstm_recurrence_kernel,
                                    hp=Hp, tc_steps=Tc)
    h_all = pl.pallas_call(
        lstm_kernel,
        out_shape=jax.ShapeDtypeStruct((Tp, Bp, Hp), jnp.float32),
        grid_spec=pltpu.PrefetchScalarGridSpec(
            num_scalar_prefetch=0,
            grid=(num_b, num_t),
            in_specs=[
                pl.BlockSpec((Tc, B_TILE, 4 * Hp), lambda bb, tt: (tt, bb, 0)),
                pl.BlockSpec((B_TILE, Hp), lambda bb, tt: (bb, 0)),
                pl.BlockSpec((Hp, 4 * Hp), lambda bb, tt: (0, 0)),
            ],
            out_specs=pl.BlockSpec((Tc, B_TILE, Hp),
                                   lambda bb, tt: (tt, bb, 0)),
            scratch_shapes=[
                pltpu.VMEM((B_TILE, Hp), jnp.float32),   # h carry
                pltpu.VMEM((B_TILE, Hp), jnp.float32),   # c carry
            ],
        ),
        compiler_params=pltpu.CompilerParams(
            dimension_semantics=("parallel", "arbitrary")),
    )(gx_pad, h0_pad, w_hh_pad)

    # ---- pallas call 2: parallel output projection + argmax ----------------
    Mp = Tp * Bp                                   # rows (multiple of 8)
    tm = min(128, Mp)
    Mp2 = _round_up(Mp, tm)
    h_flat = h_all.reshape(Mp, Hp)
    if Mp2 != Mp:
        h_flat = jnp.pad(h_flat, ((0, Mp2 - Mp), (0, 0)))

    if V >= v_tile:
        Vp = _round_up(V, v_tile)
        tv = v_tile                                 # tile V (VMEM headroom, v7x)
    else:
        Vp = _round_up(V, 128)
        tv = Vp

    w_out_pad = jnp.pad(w_out_t, ((0, Hp - H), (0, Vp - V)))
    b_out_pad = jnp.pad(b_out, ((0, 0), (0, Vp - V)))

    proj_kernel = functools.partial(_proj_argmax_kernel, v_real=V, tv=tv)
    logits_pad, preds_pad = pl.pallas_call(
        proj_kernel,
        out_shape=(jax.ShapeDtypeStruct((Mp2, Vp), jnp.float32),
                   jax.ShapeDtypeStruct((Mp2, 1), jnp.int32)),
        grid_spec=pltpu.PrefetchScalarGridSpec(
            num_scalar_prefetch=0,
            grid=(Mp2 // tm, Vp // tv),
            in_specs=[
                pl.BlockSpec((tm, Hp), lambda m, v: (m, 0)),
                pl.BlockSpec((Hp, tv), lambda m, v: (0, v)),
                pl.BlockSpec((1, tv), lambda m, v: (0, v)),
            ],
            out_specs=[
                pl.BlockSpec((tm, tv), lambda m, v: (m, v)),
                pl.BlockSpec((tm, 1), lambda m, v: (m, 0)),
            ],
            scratch_shapes=[
                pltpu.VMEM((tm, 1), jnp.float32),   # running max
                pltpu.VMEM((tm, 1), jnp.int32),     # running argmax
            ],
        ),
        compiler_params=pltpu.CompilerParams(
            dimension_semantics=("parallel", "arbitrary")),
    )(h_flat, w_out_pad, b_out_pad)

    # ---- strip padding, restore batch-first layout -------------------------
    logits = logits_pad[:Mp].reshape(Tp, Bp, Vp)[:T, :B, :V]
    logits = jnp.transpose(logits, (1, 0, 2))                    # (B, T, V)
    preds = preds_pad[:Mp, 0].reshape(Tp, Bp)[:T, :B]
    preds = jnp.transpose(preds, (1, 0)).astype(jnp.int32)       # (B, T)
    return {"logits": logits, "predictions": preds}


# ---------------------------------------------------------------------------
# Pure-JAX reference of the same forward pass (for verification).
# ---------------------------------------------------------------------------
def _reference_forward(inputs, targets, params):
    emb = params["embedding"]
    w_ih_t, w_hh_t, b = params["w_ih_t"], params["w_hh_t"], params["b"]
    w_out_t, b_out = params["w_out_t"], params["b_out"]
    B, H = inputs.shape

    bos = jnp.full((B, 1), 1, dtype=targets.dtype)
    in_tokens = jnp.concatenate([bos, targets[:, :-1]], axis=1)
    x_emb = jnp.take(emb, in_tokens, axis=0)               # (B, T, I)

    def step(carry, x_t):
        h, c = carry
        gates = x_t @ w_ih_t + h @ w_hh_t + b
        i_g = jax.nn.sigmoid(gates[:, 0 * H:1 * H])
        f_g = jax.nn.sigmoid(gates[:, 1 * H:2 * H])
        g_g = jnp.tanh(gates[:, 2 * H:3 * H])
        o_g = jax.nn.sigmoid(gates[:, 3 * H:4 * H])
        c_new = f_g * c + i_g * g_g
        h_new = o_g * jnp.tanh(c_new)
        logits = h_new @ w_out_t + b_out
        return (h_new, c_new), logits

    (_, _), logits_t = lax.scan(step, (inputs, jnp.zeros_like(inputs)),
                                jnp.transpose(x_emb, (1, 0, 2)))
    logits = jnp.transpose(logits_t, (1, 0, 2))
    preds = jnp.argmax(logits, axis=2).astype(jnp.int32)
    return {"logits": logits, "predictions": preds}


if __name__ == "__main__":
    B, T = 4, 6              # batch, num_decoding_steps (targets given)
    INPUT_SIZE = 16          # embedding / LSTM input size
    HIDDEN = 32              # LSTM hidden size (== inputs feature dim)
    VOCAB = 128              # vocabulary size

    key = jax.random.PRNGKey(0)
    ks = jax.random.split(key, 8)

    params = {
        "embedding": jax.random.normal(ks[0], (VOCAB, INPUT_SIZE), jnp.float32) * 0.1,
        # PyTorch LSTM weights, pre-transposed for right-multiplication.
        "w_ih_t": jax.random.normal(ks[1], (INPUT_SIZE, 4 * HIDDEN), jnp.float32) * 0.1,
        "w_hh_t": jax.random.normal(ks[2], (HIDDEN, 4 * HIDDEN), jnp.float32) * 0.1,
        "b": (jax.random.normal(ks[3], (1, 4 * HIDDEN), jnp.float32) * 0.1
              + jax.random.normal(ks[4], (1, 4 * HIDDEN), jnp.float32) * 0.1),
        "w_out_t": jax.random.normal(ks[5], (HIDDEN, VOCAB), jnp.float32) * 0.1,
        "b_out": jax.random.normal(ks[6], (1, VOCAB), jnp.float32) * 0.1,
    }

    inputs = jax.random.normal(ks[7], (B, HIDDEN), jnp.float32)          # (B, H)
    targets = jax.random.randint(jax.random.PRNGKey(1), (B, T), 0, VOCAB,
                                 dtype=jnp.int32)                        # (B, T)

    out = elmo_decoder_forward(inputs, targets, params)
    jax.block_until_ready(out)

    ref = _reference_forward(inputs, targets, params)
    assert out["logits"].shape == (B, T, VOCAB)
    assert out["predictions"].shape == (B, T)
    assert jnp.allclose(out["logits"], ref["logits"], atol=1e-4, rtol=1e-4)
    assert jnp.array_equal(out["predictions"], ref["predictions"])
    # NOTE: predictions are int32 (TPU default) vs torch .long() int64.

    print("KERNEL_OK")
</pallas_src>

<mosaic_0001>
module attributes {stable_mosaic.version = 11 : i64} {
  func.func @_lstm_recurrence_kernel(%arg0: i32, %arg1: i32, %arg2: memref<6x8x512xf32, #tpu.memory_space<vmem>>, %arg3: memref<8x128xf32, #tpu.memory_space<vmem>>, %arg4: memref<128x512xf32, #tpu.memory_space<vmem>>, %arg5: memref<6x8x128xf32, #tpu.memory_space<vmem>>, %arg6: memref<8x128xf32, #tpu.memory_space<vmem>>, %arg7: memref<8x128xf32, #tpu.memory_space<vmem>>) attributes {dimension_semantics = [#tpu.dimension_semantics<parallel>, #tpu.dimension_semantics<arbitrary>], iteration_bounds = array<i64: 1, 1>, scalar_prefetch = 0 : i64, scratch_operands = 2 : i64, tpu.core_type = #tpu.core_type<tc>, window_params = [{transform_indices = @transform_0, window_bounds = array<i64: 6, 8, 512>}, {transform_indices = @transform_1, window_bounds = array<i64: 8, 128>}, {pipeline_mode = #tpu.pipeline_mode<synchronous>, transform_indices = @transform_2, window_bounds = array<i64: 128, 512>}, {transform_indices = @transform_3, window_bounds = array<i64: 6, 8, 128>}]} {
    %c0_i32 = arith.constant 0 : i32
    %0 = arith.cmpi eq, %arg1, %c0_i32 : i32
    %1 = arith.extui %0 : i1 to i32
    %c0_i32_0 = arith.constant 0 : i32
    %2 = arith.cmpi ne, %1, %c0_i32_0 : i32
    scf.if %2 {
      %c0_58 = arith.constant 0 : index
      %c0_59 = arith.constant 0 : index
      %212 = vector.load %arg3[%c0_58, %c0_59] : memref<8x128xf32, #tpu.memory_space<vmem>>, vector<8x128xf32>
      %c0_60 = arith.constant 0 : index
      %c0_61 = arith.constant 0 : index
      %213 = vector.load %arg6[%c0_60, %c0_61] : memref<8x128xf32, #tpu.memory_space<vmem>>, vector<8x128xf32>
      tpu.vector_store %arg6[%c0_60, %c0_61], %212 {strides = array<i32>} : memref<8x128xf32, #tpu.memory_space<vmem>>, vector<8x128xf32>,
      %cst_62 = arith.constant 0.000000e+00 : f32
      %214 = vector.broadcast %cst_62 : f32 to vector<8x128xf32>
      %c0_63 = arith.constant 0 : index
      %c0_64 = arith.constant 0 : index
      %215 = vector.load %arg7[%c0_63, %c0_64] : memref<8x128xf32, #tpu.memory_space<vmem>>, vector<8x128xf32>
      tpu.vector_store %arg7[%c0_63, %c0_64], %214 {strides = array<i32>} : memref<8x128xf32, #tpu.memory_space<vmem>>, vector<8x128xf32>,
    } else {
    }
    %c0 = arith.constant 0 : index
    %c0_1 = arith.constant 0 : index
    %3 = vector.load %arg4[%c0, %c0_1] : memref<128x512xf32, #tpu.memory_space<vmem>>, vector<128x512xf32>
    %c0_2 = arith.constant 0 : index
    %c0_3 = arith.constant 0 : index
    %4 = vector.load %arg6[%c0_2, %c0_3] : memref<8x128xf32, #tpu.memory_space<vmem>>, vector<8x128xf32>
    %c0_4 = arith.constant 0 : index
    %c0_5 = arith.constant 0 : index
    %5 = vector.load %arg7[%c0_4, %c0_5] : memref<8x128xf32, #tpu.memory_space<vmem>>, vector<8x128xf32>
    %c0_i32_6 = arith.constant 0 : i32
    %6 = arith.index_cast %c0_i32_6 : i32 to index
    %c0_7 = arith.constant 0 : index
    %c0_8 = arith.constant 0 : index
    %7 = vector.load %arg2[%6, %c0_7, %c0_8] : memref<6x8x512xf32, #tpu.memory_space<vmem>>, vector<1x8x512xf32>
    %8 = vector.shape_cast %7 : vector<1x8x512xf32> to vector<8x512xf32>
    %cst = arith.constant dense<0.000000e+00> : vector<8x512xf32>
    %9 = tpu.matmul %4, %3, %cst {dimension_numbers = #tpu.dot_dimension_numbers<[1], [0], [0], [1], [0, 0, 1, 1], [], []>} : vector<8x128xf32>, vector<128x512xf32>, vector<8x512xf32> -> vector<8x512xf32>
    %10 = arith.addf %8, %9 : vector<8x512xf32>
    %11 = vector.extract_strided_slice %10 {offsets = [0, 0], sizes = [8, 128], strides = [1, 1]} : vector<8x512xf32> to vector<8x128xf32>
    %12 = arith.negf %11 : vector<8x128xf32>
    %13 = math.exp %12 : vector<8x128xf32>
    %cst_9 = arith.constant 1.000000e+00 : f32
    %14 = vector.broadcast %cst_9 : f32 to vector<8x128xf32>
    %15 = arith.addf %14, %13 : vector<8x128xf32>
    %16 = arith.divf %14, %15 : vector<8x128xf32>
    %17 = vector.extract_strided_slice %10 {offsets = [0, 128], sizes = [8, 128], strides = [1, 1]} : vector<8x512xf32> to vector<8x128xf32>
    %18 = arith.negf %17 : vector<8x128xf32>
    %19 = math.exp %18 : vector<8x128xf32>
    %cst_10 = arith.constant 1.000000e+00 : f32
    %20 = vector.broadcast %cst_10 : f32 to vector<8x128xf32>
    %21 = arith.addf %20, %19 : vector<8x128xf32>
    %22 = arith.divf %20, %21 : vector<8x128xf32>
    %23 = vector.extract_strided_slice %10 {offsets = [0, 256], sizes = [8, 128], strides = [1, 1]} : vector<8x512xf32> to vector<8x128xf32>
    %24 = math.tanh %23 : vector<8x128xf32>
    %25 = vector.extract_strided_slice %10 {offsets = [0, 384], sizes = [8, 128], strides = [1, 1]} : vector<8x512xf32> to vector<8x128xf32>
    %26 = arith.negf %25 : vector<8x128xf32>
    %27 = math.exp %26 : vector<8x128xf32>
    %cst_11 = arith.constant 1.000000e+00 : f32
    %28 = vector.broadcast %cst_11 : f32 to vector<8x128xf32>
    %29 = arith.addf %28, %27 : vector<8x128xf32>
    %30 = arith.divf %28, %29 : vector<8x128xf32>
    %31 = arith.mulf %22, %5 : vector<8x128xf32>
    %32 = arith.mulf %16, %24 : vector<8x128xf32>
    %33 = arith.addf %31, %32 : vector<8x128xf32>
    %34 = math.tanh %33 : vector<8x128xf32>
    %35 = arith.mulf %30, %34 : vector<8x128xf32>
    %36 = arith.index_cast %c0_i32_6 : i32 to index
    %c0_12 = arith.constant 0 : index
    %c0_13 = arith.constant 0 : index
    %37 = vector.load %arg5[%36, %c0_12, %c0_13] : memref<6x8x128xf32, #tpu.memory_space<vmem>>, vector<1x8x128xf32>
    %38 = vector.shape_cast %37 : vector<1x8x128xf32> to vector<8x128xf32>
    %39 = vector.shape_cast %35 : vector<8x128xf32> to vector<1x8x128xf32>
    tpu.vector_store %arg5[%36, %c0_12, %c0_13], %39 {strides = array<i32>} : memref<6x8x128xf32, #tpu.memory_space<vmem>>, vector<1x8x128xf32>,
    %c1_i32 = arith.constant 1 : i32
    %40 = arith.index_cast %c1_i32 : i32 to index
    %c0_14 = arith.constant 0 : index
    %c0_15 = arith.constant 0 : index
    %41 = vector.load %arg2[%40, %c0_14, %c0_15] : memref<6x8x512xf32, #tpu.memory_space<vmem>>, vector<1x8x512xf32>
    %42 = vector.shape_cast %41 : vector<1x8x512xf32> to vector<8x512xf32>
    %cst_16 = arith.constant dense<0.000000e+00> : vector<8x512xf32>
    %43 = tpu.matmul %35, %3, %cst_16 {dimension_numbers = #tpu.dot_dimension_numbers<[1], [0], [0], [1], [0, 0, 1, 1], [], []>} : vector<8x128xf32>, vector<128x512xf32>, vector<8x512xf32> -> vector<8x512xf32>
    %44 = arith.addf %42, %43 : vector<8x512xf32>
    %45 = vector.extract_strided_slice %44 {offsets = [0, 0], sizes = [8, 128], strides = [1, 1]} : vector<8x512xf32> to vector<8x128xf32>
    %46 = arith.negf %45 : vector<8x128xf32>
    %47 = math.exp %46 : vector<8x128xf32>
    %cst_17 = arith.constant 1.000000e+00 : f32
    %48 = vector.broadcast %cst_17 : f32 to vector<8x128xf32>
    %49 = arith.addf %48, %47 : vector<8x128xf32>
    %50 = arith.divf %48, %49 : vector<8x128xf32>
    %51 = vector.extract_strided_slice %44 {offsets = [0, 128], sizes = [8, 128], strides = [1, 1]} : vector<8x512xf32> to vector<8x128xf32>
    %52 = arith.negf %51 : vector<8x128xf32>
    %53 = math.exp %52 : vector<8x128xf32>
    %cst_18 = arith.constant 1.000000e+00 : f32
    %54 = vector.broadcast %cst_18 : f32 to vector<8x128xf32>
    %55 = arith.addf %54, %53 : vector<8x128xf32>
    %56 = arith.divf %54, %55 : vector<8x128xf32>
    %57 = vector.extract_strided_slice %44 {offsets = [0, 256], sizes = [8, 128], strides = [1, 1]} : vector<8x512xf32> to vector<8x128xf32>
    %58 = math.tanh %57 : vector<8x128xf32>
    %59 = vector.extract_strided_slice %44 {offsets = [0, 384], sizes = [8, 128], strides = [1, 1]} : vector<8x512xf32> to vector<8x128xf32>
    %60 = arith.negf %59 : vector<8x128xf32>
    %61 = math.exp %60 : vector<8x128xf32>
    %cst_19 = arith.constant 1.000000e+00 : f32
    %62 = vector.broadcast %cst_19 : f32 to vector<8x128xf32>
    %63 = arith.addf %62, %61 : vector<8x128xf32>
    %64 = arith.divf %62, %63 : vector<8x128xf32>
    %65 = arith.mulf %56, %33 : vector<8x128xf32>
    %66 = arith.mulf %50, %58 : vector<8x128xf32>
    %67 = arith.addf %65, %66 : vector<8x128xf32>
    %68 = math.tanh %67 : vector<8x128xf32>
    %69 = arith.mulf %64, %68 : vector<8x128xf32>
    %70 = arith.index_cast %c1_i32 : i32 to index
    %c0_20 = arith.constant 0 : index
    %c0_21 = arith.constant 0 : index
    %71 = vector.load %arg5[%70, %c0_20, %c0_21] : memref<6x8x128xf32, #tpu.memory_space<vmem>>, vector<1x8x128xf32>
    %72 = vector.shape_cast %71 : vector<1x8x128xf32> to vector<8x128xf32>
    %73 = vector.shape_cast %69 : vector<8x128xf32> to vector<1x8x128xf32>
    tpu.vector_store %arg5[%70, %c0_20, %c0_21], %73 {strides = array<i32>} : memref<6x8x128xf32, #tpu.memory_space<vmem>>, vector<1x8x128xf32>,
    %c2_i32 = arith.constant 2 : i32
    %74 = arith.index_cast %c2_i32 : i32 to index
    %c0_22 = arith.constant 0 : index
    %c0_23 = arith.constant 0 : index
    %75 = vector.load %arg2[%74, %c0_22, %c0_23] : memref<6x8x512xf32, #tpu.memory_space<vmem>>, vector<1x8x512xf32>
    %76 = vector.shape_cast %75 : vector<1x8x512xf32> to vector<8x512xf32>
    %cst_24 = arith.constant dense<0.000000e+00> : vector<8x512xf32>
    %77 = tpu.matmul %69, %3, %cst_24 {dimension_numbers = #tpu.dot_dimension_numbers<[1], [0], [0], [1], [0, 0, 1, 1], [], []>} : vector<8x128xf32>, vector<128x512xf32>, vector<8x512xf32> -> vector<8x512xf32>
    %78 = arith.addf %76, %77 : vector<8x512xf32>
    %79 = vector.extract_strided_slice %78 {offsets = [0, 0], sizes = [8, 128], strides = [1, 1]} : vector<8x512xf32> to vector<8x128xf32>
    %80 = arith.negf %79 : vector<8x128xf32>
    %81 = math.exp %80 : vector<8x128xf32>
    %cst_25 = arith.constant 1.000000e+00 : f32
    %82 = vector.broadcast %cst_25 : f32 to vector<8x128xf32>
    %83 = arith.addf %82, %81 : vector<8x128xf32>
    %84 = arith.divf %82, %83 : vector<8x128xf32>
    %85 = vector.extract_strided_slice %78 {offsets = [0, 128], sizes = [8, 128], strides = [1, 1]} : vector<8x512xf32> to vector<8x128xf32>
    %86 = arith.negf %85 : vector<8x128xf32>
    %87 = math.exp %86 : vector<8x128xf32>
    %cst_26 = arith.constant 1.000000e+00 : f32
    %88 = vector.broadcast %cst_26 : f32 to vector<8x128xf32>
    %89 = arith.addf %88, %87 : vector<8x128xf32>
    %90 = arith.divf %88, %89 : vector<8x128xf32>
    %91 = vector.extract_strided_slice %78 {offsets = [0, 256], sizes = [8, 128], strides = [1, 1]} : vector<8x512xf32> to vector<8x128xf32>
    %92 = math.tanh %91 : vector<8x128xf32>
    %93 = vector.extract_strided_slice %78 {offsets = [0, 384], sizes = [8, 128], strides = [1, 1]} : vector<8x512xf32> to vector<8x128xf32>
    %94 = arith.negf %93 : vector<8x128xf32>
    %95 = math.exp %94 : vector<8x128xf32>
    %cst_27 = arith.constant 1.000000e+00 : f32
    %96 = vector.broadcast %cst_27 : f32 to vector<8x128xf32>
    %97 = arith.addf %96, %95 : vector<8x128xf32>
    %98 = arith.divf %96, %97 : vector<8x128xf32>
    %99 = arith.mulf %90, %67 : vector<8x128xf32>
    %100 = arith.mulf %84, %92 : vector<8x128xf32>
    %101 = arith.addf %99, %100 : vector<8x128xf32>
    %102 = math.tanh %101 : vector<8x128xf32>
    %103 = arith.mulf %98, %102 : vector<8x128xf32>
    %104 = arith.index_cast %c2_i32 : i32 to index
    %c0_28 = arith.constant 0 : index
    %c0_29 = arith.constant 0 : index
    %105 = vector.load %arg5[%104, %c0_28, %c0_29] : memref<6x8x128xf32, #tpu.memory_space<vmem>>, vector<1x8x128xf32>
    %106 = vector.shape_cast %105 : vector<1x8x128xf32> to vector<8x128xf32>
    %107 = vector.shape_cast %103 : vector<8x128xf32> to vector<1x8x128xf32>
    tpu.vector_store %arg5[%104, %c0_28, %c0_29], %107 {strides = array<i32>} : memref<6x8x128xf32, #tpu.memory_space<vmem>>, vector<1x8x128xf32>,
    %c3_i32 = arith.constant 3 : i32
    %108 = arith.index_cast %c3_i32 : i32 to index
    %c0_30 = arith.constant 0 : index
    %c0_31 = arith.constant 0 : index
    %109 = vector.load %arg2[%108, %c0_30, %c0_31] : memref<6x8x512xf32, #tpu.memory_space<vmem>>, vector<1x8x512xf32>
    %110 = vector.shape_cast %109 : vector<1x8x512xf32> to vector<8x512xf32>
    %cst_32 = arith.constant dense<0.000000e+00> : vector<8x512xf32>
    %111 = tpu.matmul %103, %3, %cst_32 {dimension_numbers = #tpu.dot_dimension_numbers<[1], [0], [0], [1], [0, 0, 1, 1], [], []>} : vector<8x128xf32>, vector<128x512xf32>, vector<8x512xf32> -> vector<8x512xf32>
    %112 = arith.addf %110, %111 : vector<8x512xf32>
    %113 = vector.extract_strided_slice %112 {offsets = [0, 0], sizes = [8, 128], strides = [1, 1]} : vector<8x512xf32> to vector<8x128xf32>
    %114 = arith.negf %113 : vector<8x128xf32>
    %115 = math.exp %114 : vector<8x128xf32>
    %cst_33 = arith.constant 1.000000e+00 : f32
    %116 = vector.broadcast %cst_33 : f32 to vector<8x128xf32>
    %117 = arith.addf %116, %115 : vector<8x128xf32>
    %118 = arith.divf %116, %117 : vector<8x128xf32>
    %119 = vector.extract_strided_slice %112 {offsets = [0, 128], sizes = [8, 128], strides = [1, 1]} : vector<8x512xf32> to vector<8x128xf32>
    %120 = arith.negf %119 : vector<8x128xf32>
    %121 = math.exp %120 : vector<8x128xf32>
    %cst_34 = arith.constant 1.000000e+00 : f32
    %122 = vector.broadcast %cst_34 : f32 to vector<8x128xf32>
    %123 = arith.addf %122, %121 : vector<8x128xf32>
    %124 = arith.divf %122, %123 : vector<8x128xf32>
    %125 = vector.extract_strided_slice %112 {offsets = [0, 256], sizes = [8, 128], strides = [1, 1]} : vector<8x512xf32> to vector<8x128xf32>
    %126 = math.tanh %125 : vector<8x128xf32>
    %127 = vector.extract_strided_slice %112 {offsets = [0, 384], sizes = [8, 128], strides = [1, 1]} : vector<8x512xf32> to vector<8x128xf32>
    %128 = arith.negf %127 : vector<8x128xf32>
    %129 = math.exp %128 : vector<8x128xf32>
    %cst_35 = arith.constant 1.000000e+00 : f32
    %130 = vector.broadcast %cst_35 : f32 to vector<8x128xf32>
    %131 = arith.addf %130, %129 : vector<8x128xf32>
    %132 = arith.divf %130, %131 : vector<8x128xf32>
    %133 = arith.mulf %124, %101 : vector<8x128xf32>
    %134 = arith.mulf %118, %126 : vector<8x128xf32>
    %135 = arith.addf %133, %134 : vector<8x128xf32>
    %136 = math.tanh %135 : vector<8x128xf32>
    %137 = arith.mulf %132, %136 : vector<8x128xf32>
    %138 = arith.index_cast %c3_i32 : i32 to index
    %c0_36 = arith.constant 0 : index
    %c0_37 = arith.constant 0 : index
    %139 = vector.load %arg5[%138, %c0_36, %c0_37] : memref<6x8x128xf32, #tpu.memory_space<vmem>>, vector<1x8x128xf32>
    %140 = vector.shape_cast %139 : vector<1x8x128xf32> to vector<8x128xf32>
    %141 = vector.shape_cast %137 : vector<8x128xf32> to vector<1x8x128xf32>
    tpu.vector_store %arg5[%138, %c0_36, %c0_37], %141 {strides = array<i32>} : memref<6x8x128xf32, #tpu.memory_space<vmem>>, vector<1x8x128xf32>,
    %c4_i32 = arith.constant 4 : i32
    %142 = arith.index_cast %c4_i32 : i32 to index
    %c0_38 = arith.constant 0 : index
    %c0_39 = arith.constant 0 : index
    %143 = vector.load %arg2[%142, %c0_38, %c0_39] : memref<6x8x512xf32, #tpu.memory_space<vmem>>, vector<1x8x512xf32>
    %144 = vector.shape_cast %143 : vector<1x8x512xf32> to vector<8x512xf32>
    %cst_40 = arith.constant dense<0.000000e+00> : vector<8x512xf32>
    %145 = tpu.matmul %137, %3, %cst_40 {dimension_numbers = #tpu.dot_dimension_numbers<[1], [0], [0], [1], [0, 0, 1, 1], [], []>} : vector<8x128xf32>, vector<128x512xf32>, vector<8x512xf32> -> vector<8x512xf32>
    %146 = arith.addf %144, %145 : vector<8x512xf32>
    %147 = vector.extract_strided_slice %146 {offsets = [0, 0], sizes = [8, 128], strides = [1, 1]} : vector<8x512xf32> to vector<8x128xf32>
    %148 = arith.negf %147 : vector<8x128xf32>
    %149 = math.exp %148 : vector<8x128xf32>
    %cst_41 = arith.constant 1.000000e+00 : f32
    %150 = vector.broadcast %cst_41 : f32 to vector<8x128xf32>
    %151 = arith.addf %150, %149 : vector<8x128xf32>
    %152 = arith.divf %150, %151 : vector<8x128xf32>
    %153 = vector.extract_strided_slice %146 {offsets = [0, 128], sizes = [8, 128], strides = [1, 1]} : vector<8x512xf32> to vector<8x128xf32>
    %154 = arith.negf %153 : vector<8x128xf32>
    %155 = math.exp %154 : vector<8x128xf32>
    %cst_42 = arith.constant 1.000000e+00 : f32
    %156 = vector.broadcast %cst_42 : f32 to vector<8x128xf32>
    %157 = arith.addf %156, %155 : vector<8x128xf32>
    %158 = arith.divf %156, %157 : vector<8x128xf32>
    %159 = vector.extract_strided_slice %146 {offsets = [0, 256], sizes = [8, 128], strides = [1, 1]} : vector<8x512xf32> to vector<8x128xf32>
    %160 = math.tanh %159 : vector<8x128xf32>
    %161 = vector.extract_strided_slice %146 {offsets = [0, 384], sizes = [8, 128], strides = [1, 1]} : vector<8x512xf32> to vector<8x128xf32>
    %162 = arith.negf %161 : vector<8x128xf32>
    %163 = math.exp %162 : vector<8x128xf32>
    %cst_43 = arith.constant 1.000000e+00 : f32
    %164 = vector.broadcast %cst_43 : f32 to vector<8x128xf32>
    %165 = arith.addf %164, %163 : vector<8x128xf32>
    %166 = arith.divf %164, %165 : vector<8x128xf32>
    %167 = arith.mulf %158, %135 : vector<8x128xf32>
    %168 = arith.mulf %152, %160 : vector<8x128xf32>
    %169 = arith.addf %167, %168 : vector<8x128xf32>
    %170 = math.tanh %169 : vector<8x128xf32>
    %171 = arith.mulf %166, %170 : vector<8x128xf32>
    %172 = arith.index_cast %c4_i32 : i32 to index
    %c0_44 = arith.constant 0 : index
    %c0_45 = arith.constant 0 : index
    %173 = vector.load %arg5[%172, %c0_44, %c0_45] : memref<6x8x128xf32, #tpu.memory_space<vmem>>, vector<1x8x128xf32>
    %174 = vector.shape_cast %173 : vector<1x8x128xf32> to vector<8x128xf32>
    %175 = vector.shape_cast %171 : vector<8x128xf32> to vector<1x8x128xf32>
    tpu.vector_store %arg5[%172, %c0_44, %c0_45], %175 {strides = array<i32>} : memref<6x8x128xf32, #tpu.memory_space<vmem>>, vector<1x8x128xf32>,
    %c5_i32 = arith.constant 5 : i32
    %176 = arith.index_cast %c5_i32 : i32 to index
    %c0_46 = arith.constant 0 : index
    %c0_47 = arith.constant 0 : index
    %177 = vector.load %arg2[%176, %c0_46, %c0_47] : memref<6x8x512xf32, #tpu.memory_space<vmem>>, vector<1x8x512xf32>
    %178 = vector.shape_cast %177 : vector<1x8x512xf32> to vector<8x512xf32>
    %cst_48 = arith.constant dense<0.000000e+00> : vector<8x512xf32>
    %179 = tpu.matmul %171, %3, %cst_48 {dimension_numbers = #tpu.dot_dimension_numbers<[1], [0], [0], [1], [0, 0, 1, 1], [], []>} : vector<8x128xf32>, vector<128x512xf32>, vector<8x512xf32> -> vector<8x512xf32>
    %180 = arith.addf %178, %179 : vector<8x512xf32>
    %181 = vector.extract_strided_slice %180 {offsets = [0, 0], sizes = [8, 128], strides = [1, 1]} : vector<8x512xf32> to vector<8x128xf32>
    %182 = arith.negf %181 : vector<8x128xf32>
    %183 = math.exp %182 : vector<8x128xf32>
    %cst_49 = arith.constant 1.000000e+00 : f32
    %184 = vector.broadcast %cst_49 : f32 to vector<8x128xf32>
    %185 = arith.addf %184, %183 : vector<8x128xf32>
    %186 = arith.divf %184, %185 : vector<8x128xf32>
    %187 = vector.extract_strided_slice %180 {offsets = [0, 128], sizes = [8, 128], strides = [1, 1]} : vector<8x512xf32> to vector<8x128xf32>
    %188 = arith.negf %187 : vector<8x128xf32>
    %189 = math.exp %188 : vector<8x128xf32>
    %cst_50 = arith.constant 1.000000e+00 : f32
    %190 = vector.broadcast %cst_50 : f32 to vector<8x128xf32>
    %191 = arith.addf %190, %189 : vector<8x128xf32>
    %192 = arith.divf %190, %191 : vector<8x128xf32>
    %193 = vector.extract_strided_slice %180 {offsets = [0, 256], sizes = [8, 128], strides = [1, 1]} : vector<8x512xf32> to vector<8x128xf32>
    %194 = math.tanh %193 : vector<8x128xf32>
    %195 = vector.extract_strided_slice %180 {offsets = [0, 384], sizes = [8, 128], strides = [1, 1]} : vector<8x512xf32> to vector<8x128xf32>
    %196 = arith.negf %195 : vector<8x128xf32>
    %197 = math.exp %196 : vector<8x128xf32>
    %cst_51 = arith.constant 1.000000e+00 : f32
    %198 = vector.broadcast %cst_51 : f32 to vector<8x128xf32>
    %199 = arith.addf %198, %197 : vector<8x128xf32>
    %200 = arith.divf %198, %199 : vector<8x128xf32>
    %201 = arith.mulf %192, %169 : vector<8x128xf32>
    %202 = arith.mulf %186, %194 : vector<8x128xf32>
    %203 = arith.addf %201, %202 : vector<8x128xf32>
    %204 = math.tanh %203 : vector<8x128xf32>
    %205 = arith.mulf %200, %204 : vector<8x128xf32>
    %206 = arith.index_cast %c5_i32 : i32 to index
    %c0_52 = arith.constant 0 : index
    %c0_53 = arith.constant 0 : index
    %207 = vector.load %arg5[%206, %c0_52, %c0_53] : memref<6x8x128xf32, #tpu.memory_space<vmem>>, vector<1x8x128xf32>
    %208 = vector.shape_cast %207 : vector<1x8x128xf32> to vector<8x128xf32>
    %209 = vector.shape_cast %205 : vector<8x128xf32> to vector<1x8x128xf32>
    tpu.vector_store %arg5[%206, %c0_52, %c0_53], %209 {strides = array<i32>} : memref<6x8x128xf32, #tpu.memory_space<vmem>>, vector<1x8x128xf32>,
    %c6_i32 = arith.constant 6 : i32
    %c0_54 = arith.constant 0 : index
    %c0_55 = arith.constant 0 : index
    %210 = vector.load %arg6[%c0_54, %c0_55] : memref<8x128xf32, #tpu.memory_space<vmem>>, vector<8x128xf32>
    tpu.vector_store %arg6[%c0_54, %c0_55], %205 {strides = array<i32>} : memref<8x128xf32, #tpu.memory_space<vmem>>, vector<8x128xf32>,
    %c0_56 = arith.constant 0 : index
    %c0_57 = arith.constant 0 : index
    %211 = vector.load %arg7[%c0_56, %c0_57] : memref<8x128xf32, #tpu.memory_space<vmem>>, vector<8x128xf32>
    tpu.vector_store %arg7[%c0_56, %c0_57], %203 {strides = array<i32>} : memref<8x128xf32, #tpu.memory_space<vmem>>, vector<8x128xf32>,
    return
  }
  func.func @transform_0(%arg0: i32, %arg1: i32) -> (i32, i32, i32) {
    %c0_i32 = arith.constant 0 : i32
    %c0_i32_0 = arith.constant 0 : i32
    return %arg1, %arg0, %c0_i32 : i32, i32, i32
  }
  func.func @transform_1(%arg0: i32, %arg1: i32) -> (i32, i32) {
    %c0_i32 = arith.constant 0 : i32
    %c0_i32_0 = arith.constant 0 : i32
    return %arg0, %c0_i32 : i32, i32
  }
  func.func @transform_2(%arg0: i32, %arg1: i32) -> (i32, i32) {
    %c0_i32 = arith.constant 0 : i32
    %c0_i32_0 = arith.constant 0 : i32
    %c0_i32_1 = arith.constant 0 : i32
    return %c0_i32, %c0_i32_0 : i32, i32
  }
  func.func @transform_3(%arg0: i32, %arg1: i32) -> (i32, i32, i32) {
    %c0_i32 = arith.constant 0 : i32
    %c0_i32_0 = arith.constant 0 : i32
    return %arg1, %arg0, %c0_i32 : i32, i32, i32
  }
}

</mosaic_0001>

<bundles_post_ra>
// kernel: tpu_custom_call.1
= control target key start
LH: loop header
LB: loop body
LE: loop exit
PB: predicated region body
PF: predicated region fallthrough
CT: control target
= control target key end

     0   :  { %8 = vsyncpa [#allocation5], 0  ;;  %s1873_s0 = inlined_call_operand.hbm [shape: f32[6,8,512], index: 0, kind: input, shape index: {}]   ;;  %s1874_s1 = inlined_call_operand.hbm [shape: f32[8,128], index: 1, kind: input, shape index: {}]   ;;  %s1875_s2 = inlined_call_operand.hbm [shape: f32[128,512], index: 2, kind: input, shape index: {}]   ;;  %s1876_s3 = inlined_call_operand.hbm [shape: f32[6,8,128], index: 3, kind: output, shape index: {}]  }
   0x1   :  { %9 = vsyncpa [#allocation8], 0  ;;  %s29_s14 = sshll.u32 %s1874_s1, 4  ;;  %s30_s14 = int_to_ptr.hbm [resolvable:$true] %s29_s14 }
   0x2   :  { %10 = vsyncpa [#allocation6], 0  ;;  %s1365_s15 = smov [#allocation7]   ;;  %s15_s19 = sshll.u32 %s1873_s0, 4  ;;  %s16_s19 = int_to_ptr.hbm [resolvable:$true] %s15_s19 }
   0x3   :  { %s31_s16 = sshll.u32 %s1365_s15, 4  ;;  %s1366_s20 = smov [#allocation4]   ;;  %s32_s16 = int_to_ptr.vmem [resolvable:$true] %s31_s16 }
   0x4   :  { %34 = dma.hbm_to_vmem [thread:$0]  %s30_s14, 128, %s32_s16, [#allocation8]  }
   0x5   :  { %s17_s21 = sshll.u32 %s1366_s20, 4  ;;  %s1367_s22 = smov 512   ;;  %s18_s21 = int_to_ptr.vmem [resolvable:$true] %s17_s21 }
   0x6   :  { %s1368_s23 = smov 32   ;;  %s39_s1 = sshll.u32 %s1875_s2, 4  ;;  %s40_s1 = int_to_ptr.hbm [resolvable:$true] %s39_s1 }
   0x7   :  { %23 = dma.hbm_to_vmem [thread:$0]  %s16_s19, 3072, %s18_s21, [#allocation5], %s1367_s22, %s1367_s22, %s1368_s23  }
   0x8   :  { %s1369_s26 = smov [#allocation9]  }
   0x9   :  { %s41_s27 = sshll.u32 %s1369_s26, 4  ;;  %s42_s27 = int_to_ptr.vmem [resolvable:$true] %s41_s27 }
   0xa   :  { %47 = dma.hbm_to_vmem [thread:$0]  %s40_s1, 8192, %s42_s27, [#allocation8], %s1367_s22, %s1367_s22, %s1368_s23  }
   0xb   :  { %1359 = dma.done.wait [#allocation5], 3072  }
   0xc   :  { %1360 = vsyncadd [#allocation5], 4294964224 }
   0xd   :  { %1361 = dma.done.wait [#allocation8], 8320  }
   0xe   :  { %1362 = vsyncadd [#allocation8], 4294958976  ;;  %v1402_v0 = vld [vmem:[#allocation9 + $0x1e0] sm:$0xff]  ;;  %v1404_v1 = vld [vmem:[#allocation9 + $0x1e8] sm:$0xff]  ;;  %s1370_s0 = smov [#allocation10]   ;;  %s1063_s30 = sshll.u32 %s1876_s3, 4  ;;  %s1064_s30 = int_to_ptr.hbm [resolvable:$true] %s1063_s30 }
   0xf   :  { %1931 = vst [vmem:[#allocation14_spill] sm:$0xff] %v1402_v0  ;;  %v1406_v2 = vld [vmem:[#allocation9 + $0x1f8] sm:$0xff]  ;;  %137 = vmatpush.msra.mxu0 %v1402_v0  ;;  %157 = vmatpush.msra.mxu1 %v1404_v1  ;;  %v1410_v3 = vld [vmem:[#allocation9 + $0x1c0] sm:$0xff]  ;;  %v1412_v4 = vld [vmem:[#allocation9 + $0x1c8] sm:$0xff]  ;;  %s1061_s2 = sshll.u32 %s1370_s0, 4  ;;  %s1371_s4 = smov 128   ;;  %s1062_s2 = int_to_ptr.vmem [resolvable:$true] %s1061_s2 }
  0x10   :  { %v1414_v5 = vld [vmem:[#allocation9 + $0x1d8] sm:$0xff]  ;;  %197 = vmatpush.msra.mxu3 %v1406_v2  ;;  %v1417_v6 = vld [vmem:[#allocation9 + $0x1a0] sm:$0xff]  ;;  %v1419_v7 = vld [vmem:[#allocation9 + $0x1a8] sm:$0xff]  ;;  %s1372_s5 = smov 8  }
  0x11   :  { %138 = vmatpush.msra.mxu0 %v1410_v3  ;;  %158 = vmatpush.msra.mxu1 %v1412_v4  ;;  %v1423_v8 = vld [vmem:[#allocation9 + $0x1b8] sm:$0xff]  ;;  %v1426_v9 = vld [vmem:[#allocation9 + $0x180] sm:$0xff]  ;;  %v1428_v10 = vld [vmem:[#allocation9 + $0x188] sm:$0xff] }
  0x12   :  { %198 = vmatpush.msra.mxu3 %v1414_v5  ;;  %v1432_v11 = vld [vmem:[#allocation9 + $0x198] sm:$0xff]  ;;  %v1435_v12 = vld [vmem:[#allocation9 + $0x160] sm:$0xff]  ;;  %v1437_v13 = vld [vmem:[#allocation9 + $0x168] sm:$0xff] }
  0x13   :  { %139 = vmatpush.msra.mxu0 %v1417_v6  ;;  %159 = vmatpush.msra.mxu1 %v1419_v7  ;;  %v1441_v14 = vld [vmem:[#allocation9 + $0x178] sm:$0xff]  ;;  %v1444_v15 = vld [vmem:[#allocation9 + $0x140] sm:$0xff]  ;;  %v1446_v16 = vld [vmem:[#allocation9 + $0x148] sm:$0xff] }
  0x14   :  { %199 = vmatpush.msra.mxu3 %v1423_v8  ;;  %v1448_v17 = vld [vmem:[#allocation9 + $0x1f0] sm:$0xff]  ;;  %v1452_v18 = vld [vmem:[#allocation9 + $0x158] sm:$0xff]  ;;  %v1457_v20 = vld [vmem:[#allocation9 + $0x120] sm:$0xff] }
  0x15   :  { %140 = vmatpush.msra.mxu0 %v1426_v9  ;;  %160 = vmatpush.msra.mxu1 %v1428_v10  ;;  %v1454_v19 = vld [vmem:[#allocation9 + $0x1d0] sm:$0xff]  ;;  %v1459_v21 = vld [vmem:[#allocation9 + $0x128] sm:$0xff]  ;;  %v1464_v22 = vld [vmem:[#allocation9 + $0x138] sm:$0xff] }
  0x16   :  { %200 = vmatpush.msra.mxu3 %v1432_v11  ;;  %177 = vmatpush.msra.mxu2 %v1448_v17  ;;  %v1466_v23 = vld [vmem:[#allocation9 + $0x1b0] sm:$0xff]  ;;  %v1469_v24 = vld [vmem:[#allocation9 + $0x100] sm:$0xff]  ;;  %v1471_v25 = vld [vmem:[#allocation9 + $0x108] sm:$0xff] }
  0x17   :  { %141 = vmatpush.msra.mxu0 %v1435_v12  ;;  %161 = vmatpush.msra.mxu1 %v1437_v13  ;;  %v1476_v26 = vld [vmem:[#allocation9 + $0x118] sm:$0xff]  ;;  %v1478_v27 = vld [vmem:[#allocation9 + $0x190] sm:$0xff]  ;;  %v1481_v28 = vld [vmem:[#allocation9 + $0xe0] sm:$0xff] }
  0x18   :  { %201 = vmatpush.msra.mxu3 %v1441_v14  ;;  %178 = vmatpush.msra.mxu2 %v1454_v19  ;;  %v1483_v29 = vld [vmem:[#allocation9 + $0xe8] sm:$0xff]  ;;  %v1488_v30 = vld [vmem:[#allocation9 + $0xf8] sm:$0xff]  ;;  %v1490_v31 = vld [vmem:[#allocation9 + $0x170] sm:$0xff] }
  0x19   :  { %142 = vmatpush.msra.mxu0 %v1444_v15  ;;  %162 = vmatpush.msra.mxu1 %v1446_v16  ;;  %v1493_v32 = vld [vmem:[#allocation9 + $0xc0] sm:$0xff]  ;;  %v1495_v33 = vld [vmem:[#allocation9 + $0xc8] sm:$0xff]  ;;  %v1500_v34 = vld [vmem:[#allocation9 + $0xd8] sm:$0xff] }
  0x1a   :  { %202 = vmatpush.msra.mxu3 %v1452_v18  ;;  %179 = vmatpush.msra.mxu2 %v1466_v23  ;;  %1932 = vst [vmem:[#allocation15_spill] sm:$0xff] %v1500_v34  ;;  %v1502_v35 = vld [vmem:[#allocation9 + $0x150] sm:$0xff]  ;;  %v1505_v36 = vld [vmem:[#allocation9 + $0xa0] sm:$0xff]  ;;  %v1507_v37 = vld [vmem:[#allocation9 + $0xa8] sm:$0xff] }
  0x1b   :  { %143 = vmatpush.msra.mxu0 %v1457_v20  ;;  %163 = vmatpush.msra.mxu1 %v1459_v21  ;;  %1933 = vst [vmem:[#allocation16_spill] sm:$0xff] %v1505_v36  ;;  %v1512_v38 = vld [vmem:[#allocation9 + $0xb8] sm:$0xff]  ;;  %v1514_v39 = vld [vmem:[#allocation9 + $0x130] sm:$0xff]  ;;  %v1517_v40 = vld [vmem:[#allocation9 + $0x80] sm:$0xff] }
  0x1c   :  { %203 = vmatpush.msra.mxu3 %v1464_v22  ;;  %180 = vmatpush.msra.mxu2 %v1478_v27  ;;  %1934 = vst [vmem:[#allocation17_spill] sm:$0xff] %v1507_v37  ;;  %v1519_v41 = vld [vmem:[#allocation9 + $0x88] sm:$0xff]  ;;  %v1524_v42 = vld [vmem:[#allocation9 + $0x98] sm:$0xff]  ;;  %v1526_v43 = vld [vmem:[#allocation9 + $0x110] sm:$0xff] }
  0x1d   :  { %144 = vmatpush.msra.mxu0 %v1469_v24  ;;  %164 = vmatpush.msra.mxu1 %v1471_v25  ;;  %1935 = vst [vmem:[#allocation18_spill] sm:$0xff] %v1512_v38  ;;  %v1529_v44 = vld [vmem:[#allocation9 + $0x60] sm:$0xff]  ;;  %v1531_v45 = vld [vmem:[#allocation9 + $0x68] sm:$0xff]  ;;  %v1536_v46 = vld [vmem:[#allocation9 + $0x78] sm:$0xff] }
  0x1e   :  { %204 = vmatpush.msra.mxu3 %v1476_v26  ;;  %181 = vmatpush.msra.mxu2 %v1490_v31  ;;  %1936 = vst [vmem:[#allocation19_spill] sm:$0xff] %v1517_v40  ;;  %v1538_v47 = vld [vmem:[#allocation9 + $0xf0] sm:$0xff]  ;;  %v1541_v48 = vld [vmem:[#allocation9 + $0x40] sm:$0xff]  ;;  %v1543_v49 = vld [vmem:[#allocation9 + $0x48] sm:$0xff] }
  0x1f   :  { %145 = vmatpush.msra.mxu0 %v1481_v28  ;;  %165 = vmatpush.msra.mxu1 %v1483_v29  ;;  %1937 = vst [vmem:[#allocation20_spill] sm:$0xff] %v1519_v41  ;;  %v1548_v50 = vld [vmem:[#allocation9 + $0x58] sm:$0xff]  ;;  %v1550_v51 = vld [vmem:[#allocation9 + $0xd0] sm:$0xff]  ;;  %v1553_v52 = vld [vmem:[#allocation9 + $0x20] sm:$0xff] }
  0x20   :  { %205 = vmatpush.msra.mxu3 %v1488_v30  ;;  %182 = vmatpush.msra.mxu2 %v1502_v35  ;;  %1938 = vst [vmem:[#allocation21_spill] sm:$0xff] %v1524_v42  ;;  %v1555_v53 = vld [vmem:[#allocation9 + $0x28] sm:$0xff]  ;;  %v1560_v54 = vld [vmem:[#allocation9 + $0x38] sm:$0xff]  ;;  %v1562_v55 = vld [vmem:[#allocation9 + $0xb0] sm:$0xff] }
  0x21   :  { %146 = vmatpush.msra.mxu0 %v1493_v32  ;;  %166 = vmatpush.msra.mxu1 %v1495_v33  ;;  %1939 = vst [vmem:[#allocation22_spill] sm:$0xff] %v1529_v44  ;;  %v1565_v56 = vld [vmem:[#allocation9] sm:$0xff]  ;;  %v1567_v57 = vld [vmem:[#allocation9 + $0x8] sm:$0xff]  ;;  %v1572_v58 = vld [vmem:[#allocation9 + $0x18] sm:$0xff] }
  0x22   :  { %206 = vmatpush.msra.mxu3 %v1500_v34  ;;  %1940 = vst [vmem:[#allocation23_spill] sm:$0xff] %v1531_v45  ;;  %183 = vmatpush.msra.mxu2 %v1514_v39  ;;  %v64_v59 = vld [vmem:[#allocation7] sm:$0xff]  ;;  %v1578_v60 = vld [vmem:[#allocation9 + $0x90] sm:$0xff] }
  0x23   :  { %147 = vmatpush.msra.mxu0 %v1505_v36  ;;  %167 = vmatpush.msra.mxu1 %v1507_v37  ;;  %1941 = vst [vmem:[#allocation24_spill] sm:$0xff] %v1536_v46  ;;  %v1581_v61 = vld [vmem:[#allocation9 + $0x70] sm:$0xff] }
  0x24   :  { %207 = vmatpush.msra.mxu3 %v1512_v38  ;;  %1942 = vst [vmem:[#allocation25_spill] sm:$0xff] %v1541_v48  ;;  %184 = vmatpush.msra.mxu2 %v1526_v43  ;;  %v1585_v62 = vld [vmem:[#allocation9 + $0x50] sm:$0xff] }
  0x25   :  { %148 = vmatpush.msra.mxu0 %v1517_v40  ;;  %168 = vmatpush.msra.mxu1 %v1519_v41  ;;  %1943 = vst [vmem:[#allocation26_spill] sm:$0xff] %v1543_v49  ;;  %v1591_v63 = vld [vmem:[#allocation9 + $0x30] sm:$0xff] }
  0x26   :  { %208 = vmatpush.msra.mxu3 %v1524_v42  ;;  %1944 = vst [vmem:[#allocation27_spill] sm:$0xff] %v1548_v50  ;;  %185 = vmatpush.msra.mxu2 %v1538_v47 }
  0x27   :  { %149 = vmatpush.msra.mxu0 %v1529_v44  ;;  %169 = vmatpush.msra.mxu1 %v1531_v45  ;;  %1945 = vst [vmem:[#allocation28_spill] sm:$0xff] %v1550_v51 }
  0x28   :  { %209 = vmatpush.msra.mxu3 %v1536_v46  ;;  %1946 = vst [vmem:[#allocation29_spill] sm:$0xff] %v1553_v52  ;;  %186 = vmatpush.msra.mxu2 %v1550_v51 }
  0x29   :  { %1947 = vst [vmem:[#allocation30_spill] sm:$0xff] %v1555_v53  ;;  %150 = vmatpush.msra.mxu0 %v1541_v48  ;;  %170 = vmatpush.msra.mxu1 %v1543_v49 }
  0x2a   :  { %1948 = vst [vmem:[#allocation31_spill] sm:$0xff] %v1560_v54  ;;  %210 = vmatpush.msra.mxu3 %v1548_v50  ;;  %187 = vmatpush.msra.mxu2 %v1562_v55 }
  0x2b   :  { %1949 = vst [vmem:[#allocation32_spill] sm:$0xff] %v1562_v55  ;;  %151 = vmatpush.msra.mxu0 %v1553_v52  ;;  %171 = vmatpush.msra.mxu1 %v1555_v53 }
  0x2c   :  { %1950 = vst [vmem:[#allocation33_spill] sm:$0xff] %v1565_v56  ;;  %211 = vmatpush.msra.mxu3 %v1560_v54  ;;  %188 = vmatpush.msra.mxu2 %v1578_v60 }
  0x2d   :  { %1951 = vst [vmem:[#allocation34_spill] sm:$0xff] %v1567_v57  ;;  %152 = vmatpush.msra.mxu0 %v1565_v56  ;;  %172 = vmatpush.msra.mxu1 %v1567_v57 }
  0x2e   :  { %1952 = vst [vmem:[#allocation35_spill] sm:$0xff] %v1572_v58  ;;  %212 = vmatpush.msra.mxu3 %v1572_v58  ;;  %153 = vmatmul.f32.vlgmr.msra.gmra.mxu0 %v64_v59 }
  0x2f   :  { %1953 = vst [vmem:[#allocation36_spill] sm:$0xff] %v1578_v60  ;;  %173 = vmatmul.f32.vlgmr.msra.gmra.mxu1 %v64_v59  ;;  %213 = vmatmul.f32.vlgmr.msra.gmra.mxu3 %v64_v59 }
  0x30   :  { %1954 = vst [vmem:[#allocation37_spill] sm:$0xff] %v1581_v61  ;;  %290 = vmatpush.msrb.mxu0 %v1402_v0  ;;  %310 = vmatpush.msrb.mxu1 %v1404_v1  ;;  %v1597_v0 = vld [vmem:[#allocation9 + $0x10] sm:$0xff] }
  0x31   :  { %1955 = vst [vmem:[#allocation38_spill] sm:$0xff] %v1585_v62  ;;  %350 = vmatpush.msrb.mxu3 %v1406_v2  ;;  %189 = vmatpush.msra.mxu2 %v1581_v61 }
  0x32   :  { %291 = vmatpush.msrb.mxu0 %v1410_v3  ;;  %1956 = vst [vmem:[#allocation39_spill] sm:$0xff] %v1591_v63  ;;  %311 = vmatpush.msrb.mxu1 %v1412_v4 }
  0x33   :  { %351 = vmatpush.msrb.mxu3 %v1414_v5  ;;  %190 = vmatpush.msra.mxu2 %v1585_v62  ;;  %1957 = vst [vmem:[#allocation40_spill] sm:$0xff] %v1597_v0 }
  0x34   :  { %292 = vmatpush.msrb.mxu0 %v1417_v6  ;;  %312 = vmatpush.msrb.mxu1 %v1419_v7 }
  0x35   :  { %352 = vmatpush.msrb.mxu3 %v1423_v8  ;;  %191 = vmatpush.msra.mxu2 %v1591_v63 }
  0x36   :  { %293 = vmatpush.msrb.mxu0 %v1426_v9  ;;  %313 = vmatpush.msrb.mxu1 %v1428_v10 }
  0x37   :  { %353 = vmatpush.msrb.mxu3 %v1432_v11  ;;  %192 = vmatpush.msra.mxu2 %v1597_v0 }
  0x38   :  { %294 = vmatpush.msrb.mxu0 %v1435_v12  ;;  %193 = vmatmul.f32.vlgmr.msra.gmra.mxu2 %v64_v59  ;;  %v1958_v59 = vld [vmem:[#allocation14_spill] sm:$0xff] }
  0x39   :  { %314 = vmatpush.msrb.mxu1 %v1437_v13  ;;  %330 = vmatpush.msrb.mxu2 %v1448_v17 }
  0x3a   :  { %354 = vmatpush.msrb.mxu3 %v1441_v14  ;;  %295 = vmatpush.msrb.mxu0 %v1444_v15 }
  0x3b   :  { %315 = vmatpush.msrb.mxu1 %v1446_v16  ;;  %331 = vmatpush.msrb.mxu2 %v1454_v19 }
  0x3c   :  { %355 = vmatpush.msrb.mxu3 %v1452_v18  ;;  %296 = vmatpush.msrb.mxu0 %v1457_v20 }
  0x3d   :  { %316 = vmatpush.msrb.mxu1 %v1459_v21  ;;  %332 = vmatpush.msrb.mxu2 %v1466_v23 }
  0x3e   :  { %356 = vmatpush.msrb.mxu3 %v1464_v22  ;;  %297 = vmatpush.msrb.mxu0 %v1469_v24 }
  0x3f   :  { %317 = vmatpush.msrb.mxu1 %v1471_v25  ;;  %333 = vmatpush.msrb.mxu2 %v1478_v27 }
  0x40   :  { %357 = vmatpush.msrb.mxu3 %v1476_v26  ;;  %298 = vmatpush.msrb.mxu0 %v1481_v28 }
  0x41   :  { %318 = vmatpush.msrb.mxu1 %v1483_v29  ;;  %334 = vmatpush.msrb.mxu2 %v1490_v31 }
  0x42   :  { %358 = vmatpush.msrb.mxu3 %v1488_v30  ;;  %299 = vmatpush.msrb.mxu0 %v1493_v32 }
  0x43   :  { %319 = vmatpush.msrb.mxu1 %v1495_v33  ;;  %335 = vmatpush.msrb.mxu2 %v1502_v35 }
  0x44   :  { %359 = vmatpush.msrb.mxu3 %v1500_v34  ;;  %300 = vmatpush.msrb.mxu0 %v1505_v36 }
  0x45   :  { %320 = vmatpush.msrb.mxu1 %v1507_v37  ;;  %336 = vmatpush.msrb.mxu2 %v1514_v39 }
  0x46   :  { %360 = vmatpush.msrb.mxu3 %v1512_v38  ;;  %301 = vmatpush.msrb.mxu0 %v1517_v40 }
  0x47   :  { %321 = vmatpush.msrb.mxu1 %v1519_v41  ;;  %337 = vmatpush.msrb.mxu2 %v1526_v43 }
  0x48   :  { %361 = vmatpush.msrb.mxu3 %v1524_v42  ;;  %302 = vmatpush.msrb.mxu0 %v1529_v44 }
  0x49   :  { %322 = vmatpush.msrb.mxu1 %v1531_v45  ;;  %338 = vmatpush.msrb.mxu2 %v1538_v47 }
  0x4a   :  { %362 = vmatpush.msrb.mxu3 %v1536_v46  ;;  %303 = vmatpush.msrb.mxu0 %v1541_v48 }
  0x4b   :  { %323 = vmatpush.msrb.mxu1 %v1543_v49  ;;  %339 = vmatpush.msrb.mxu2 %v1550_v51 }
  0x4c   :  { %363 = vmatpush.msrb.mxu3 %v1548_v50  ;;  %304 = vmatpush.msrb.mxu0 %v1553_v52 }
  0x4d   :  { %324 = vmatpush.msrb.mxu1 %v1555_v53  ;;  %340 = vmatpush.msrb.mxu2 %v1562_v55 }
  0x4e   :  { %364 = vmatpush.msrb.mxu3 %v1560_v54  ;;  %305 = vmatpush.msrb.mxu0 %v1565_v56 }
  0x4f   :  { %325 = vmatpush.msrb.mxu1 %v1567_v57  ;;  %341 = vmatpush.msrb.mxu2 %v1578_v60 }
  0x50   :  { %365 = vmatpush.msrb.mxu3 %v1572_v58  ;;  %444 = vmatpush.msra.mxu0 %v1958_v59 }
  0x51   :  { %464 = vmatpush.msra.mxu1 %v1404_v1  ;;  %342 = vmatpush.msrb.mxu2 %v1581_v61 }
  0x52   :  { %504 = vmatpush.msra.mxu3 %v1406_v2  ;;  %445 = vmatpush.msra.mxu0 %v1410_v3 }
  0x53   :  { %465 = vmatpush.msra.mxu1 %v1412_v4  ;;  %343 = vmatpush.msrb.mxu2 %v1585_v62 }
  0x54   :  { %505 = vmatpush.msra.mxu3 %v1414_v5  ;;  %446 = vmatpush.msra.mxu0 %v1417_v6 }
  0x55   :  { %466 = vmatpush.msra.mxu1 %v1419_v7  ;;  %344 = vmatpush.msrb.mxu2 %v1591_v63 }
  0x56   :  { %506 = vmatpush.msra.mxu3 %v1423_v8  ;;  %447 = vmatpush.msra.mxu0 %v1426_v9 }
  0x57   :  { %467 = vmatpush.msra.mxu1 %v1428_v10  ;;  %345 = vmatpush.msrb.mxu2 %v1597_v0 }
  0x58   :  { %507 = vmatpush.msra.mxu3 %v1432_v11  ;;  %448 = vmatpush.msra.mxu0 %v1435_v12 }
  0x59   :  { %484 = vmatpush.msra.mxu2 %v1448_v17  ;;  %468 = vmatpush.msra.mxu1 %v1437_v13 }
  0x5a   :  { %508 = vmatpush.msra.mxu3 %v1441_v14  ;;  %449 = vmatpush.msra.mxu0 %v1444_v15 }
  0x5b   :  { %485 = vmatpush.msra.mxu2 %v1454_v19  ;;  %469 = vmatpush.msra.mxu1 %v1446_v16 }
  0x5c   :  { %509 = vmatpush.msra.mxu3 %v1452_v18  ;;  %450 = vmatpush.msra.mxu0 %v1457_v20 }
  0x5d   :  { %486 = vmatpush.msra.mxu2 %v1466_v23  ;;  %470 = vmatpush.msra.mxu1 %v1459_v21 }
  0x5e   :  { %510 = vmatpush.msra.mxu3 %v1464_v22  ;;  %451 = vmatpush.msra.mxu0 %v1469_v24 }
  0x5f   :  { %487 = vmatpush.msra.mxu2 %v1478_v27  ;;  %471 = vmatpush.msra.mxu1 %v1471_v25 }
  0x60   :  { %511 = vmatpush.msra.mxu3 %v1476_v26  ;;  %452 = vmatpush.msra.mxu0 %v1481_v28 }
  0x61   :  { %488 = vmatpush.msra.mxu2 %v1490_v31  ;;  %472 = vmatpush.msra.mxu1 %v1483_v29 }
  0x62   :  { %512 = vmatpush.msra.mxu3 %v1488_v30  ;;  %453 = vmatpush.msra.mxu0 %v1493_v32 }
  0x63   :  { %489 = vmatpush.msra.mxu2 %v1502_v35  ;;  %473 = vmatpush.msra.mxu1 %v1495_v33 }
  0x64   :  { %513 = vmatpush.msra.mxu3 %v1500_v34  ;;  %454 = vmatpush.msra.mxu0 %v1505_v36 }
  0x65   :  { %490 = vmatpush.msra.mxu2 %v1514_v39  ;;  %474 = vmatpush.msra.mxu1 %v1507_v37 }
  0x66   :  { %514 = vmatpush.msra.mxu3 %v1512_v38  ;;  %455 = vmatpush.msra.mxu0 %v1517_v40 }
  0x67   :  { %491 = vmatpush.msra.mxu2 %v1526_v43  ;;  %475 = vmatpush.msra.mxu1 %v1519_v41 }
  0x68   :  { %515 = vmatpush.msra.mxu3 %v1524_v42  ;;  %456 = vmatpush.msra.mxu0 %v1529_v44 }
  0x69   :  { %492 = vmatpush.msra.mxu2 %v1538_v47  ;;  %476 = vmatpush.msra.mxu1 %v1531_v45 }
  0x6a   :  { %516 = vmatpush.msra.mxu3 %v1536_v46  ;;  %457 = vmatpush.msra.mxu0 %v1541_v48 }
  0x6b   :  { %493 = vmatpush.msra.mxu2 %v1550_v51  ;;  %477 = vmatpush.msra.mxu1 %v1543_v49 }
  0x6c   :  { %517 = vmatpush.msra.mxu3 %v1548_v50  ;;  %458 = vmatpush.msra.mxu0 %v1553_v52  ;;  %v133_v52 = vld [vmem:[#allocation4] sm:$0xff] }
  0x6d   :  { %494 = vmatpush.msra.mxu2 %v1562_v55  ;;  %478 = vmatpush.msra.mxu1 %v1555_v53  ;;  %v134_v53 = vld [vmem:[#allocation4 + $0x8] sm:$0xff] }
  0x6e   :  { %518 = vmatpush.msra.mxu3 %v1560_v54  ;;  %459 = vmatpush.msra.mxu0 %v1565_v56 }
  0x6f   :  { %495 = vmatpush.msra.mxu2 %v1578_v60  ;;  %479 = vmatpush.msra.mxu1 %v1567_v57  ;;  %v136_v57 = vld [vmem:[#allocation4 + $0x18] sm:$0xff] }
  0x70   :  { %519 = vmatpush.msra.mxu3 %v1572_v58 }
  0x71   :  { %496 = vmatpush.msra.mxu2 %v1581_v61 }
  0x73   :  { %497 = vmatpush.msra.mxu2 %v1585_v62 }
  0x75   :  { %498 = vmatpush.msra.mxu2 %v1591_v63 }
  0x77   :  { %499 = vmatpush.msra.mxu2 %v1597_v0  ;;  %v135_v0 = vld [vmem:[#allocation4 + $0x10] sm:$0xff] }
  0xab   :  { %v154_v50 = vpop.f32.mrf.mxu0 }
  0xac   :  { %v217_v54 = vadd.f32 %v154_v50, %v133_v52  ;;  %v174_v49 = vpop.f32.mrf.mxu1 }
  0xad   :  { %v218_v48 = vadd.f32 %v174_v49, %v134_v53 }
  0xae   :  { %v1077_v46 = vmul.f32 -1.442695, %v217_v54 }
  0xaf   :  { %v1078_v56 = vmul.f32 -1.442695, %v218_v48 }
  0xb0   :  { %1103 = vpow2.f32 %v1077_v46 }
  0xb1   :  { %1105 = vpow2.f32 %v1078_v56 }
  0xb2   :  { %v214_v58 = vpop.f32.mrf.mxu3 }
  0xb3   :  { %v220_v45 = vadd.f32 %v214_v58, %v136_v57 }
  0xb5   :  { %v1079_v61 = vmul.f32 -1.442695, %v220_v45 }
  0xb6   :  { %v1104_v44 = vpop.eup %1103 }
  0xb7   :  { %v1106_v62 = vpop.eup %1105  ;;  %v224_v42 = vadd.f32 1.0, %v1104_v44  ;;  %1107 = vpow2.f32 %v1079_v61 }
  0xb8   :  { %v243_v63 = vadd.f32 1.0, %v1106_v62 }
  0xb9   :  { %1109 = vrcp.f32 %v224_v42  ;;  %v236_v57 = vand.u32 2147483648, %v224_v42  ;;  %v234_v61 = vand.u32 2147483647, %v224_v42  ;;  %vm230_vm2 = vweird.f32 %v224_v42 }
  0xba   :  { %1111 = vrcp.f32 %v243_v63  ;;  %v255_v58 = vand.u32 2147483648, %v243_v63  ;;  %v253_v41 = vand.u32 2147483647, %v243_v63  ;;  %vm249_vm3 = vweird.f32 %v243_v63 }
  0xbb   :  { %v194_v60 = vpop.f32.mrf.mxu2  ;;  %vm235_vm5 = vcmp.eq.f32.partialorder %v234_v61, 8.507059e+37  ;;  %v1966_v61 = vld [vmem:[#allocation20_spill] sm:$0xff] }
  0xbc   :  { %v219_v52 = vadd.f32 %v194_v60, %v135_v0  ;;  %vm254_vm7 = vcmp.eq.f32.partialorder %v253_v41, 8.507059e+37 }
  0xbd   :  { %v1108_v50 = vpop.eup %1107 }
  0xbe   :  { %v263_v49 = vadd.f32 1.0, %v1108_v50  ;;  %v237_v50 = vor.u32 1.1754944e-38, %v236_v57 }
  0xbf   :  { %v1110_v53 = vpop.eup %1109 }
  0xc0   :  { %v1112_v48 = vpop.eup %1111  ;;  %v226_v46 = vmul.f32 %v1110_v53, %v224_v42  ;;  %1113 = vrcp.f32 %v263_v49  ;;  %vm231_vm0 = vweird.f32 %v1110_v53  ;;  %vm269_vm9 = vweird.f32 %v263_v49 }
  0xc1   :  { %v245_v54 = vmul.f32 %v1112_v48, %v243_v63  ;;  %1115 = vtanh.f32 %v219_v52  ;;  %vm250_vm1 = vweird.f32 %v1112_v48  ;;  %vm232_vm4 = vmor %vm230_vm2, %vm231_vm0  ;;  %v256_v52 = vor.u32 1.1754944e-38, %v255_v58 }
  0xc2   :  { %v227_v56 = vsub.f32 1.0, %v226_v46  ;;  %vm251_vm6 = vmor %vm249_vm3, %vm250_vm1  ;;  %v275_v63 = vand.u32 2147483648, %v263_v49  ;;  %v273_v57 = vand.u32 2147483647, %v263_v49 }
  0xc3   :  { %v246_v45 = vsub.f32 1.0, %v245_v54 }
  0xc4   :  { %v228_v44 = vmul.f32 %v1110_v53, %v227_v56  ;;  %vm274_vm11 = vcmp.eq.f32.partialorder %v273_v57, 8.507059e+37  ;;  %v1978_v57 = vld [vmem:[#allocation30_spill] sm:$0xff] }
  0xc5   :  { %v247_v62 = vmul.f32 %v1112_v48, %v246_v45 }
  0xc6   :  { %v1114_v40 = vpop.eup %1113  ;;  %v229_v38 = vadd.f32 %v1110_v53, %v228_v44 }
  0xc7   :  { %v1116_v0 = vpop.eup %1115  ;;  %v265_v60 = vmul.f32 %v1114_v40, %v263_v49  ;;  %v248_v55 = vadd.f32 %v1112_v48, %v247_v62  ;;  %vm270_vm8 = vweird.f32 %v1114_v40  ;;  %v1964_v49 = vld [vmem:[#allocation18_spill] sm:$0xff]  ;;  %v1967_v62 = vld [vmem:[#allocation36_spill] sm:$0xff] }
  0xc8   :  { %v233_v46 = vsel %vm232_vm4, %v1110_v53, %v229_v38  ;;  %vm271_vm10 = vmor %vm269_vm9, %vm270_vm8  ;;  %v276_v53 = vor.u32 1.1754944e-38, %v275_v63  ;;  %v1977_v63 = vld [vmem:[#allocation29_spill] sm:$0xff] }
  0xc9   :  { %v266_v54 = vsub.f32 1.0, %v265_v60  ;;  %v238_v56 = vsel %vm235_vm5, %v237_v50, %v233_v46  ;;  %v252_v37 = vsel %vm251_vm6, %v1112_v48, %v248_v55  ;;  %v1965_v48 = vld [vmem:[#allocation19_spill] sm:$0xff]  ;;  %v1969_v60 = vld [vmem:[#allocation22_spill] sm:$0xff]  ;;  %v1972_v46 = vld [vmem:[#allocation24_spill] sm:$0xff] }
  0xca   :  { %v257_v45 = vsel %vm254_vm7, %v256_v52, %v252_v37  ;;  %v280_v36 = vmul.f32 %v1116_v0, %v238_v56  ;;  %v1961_v37 = vld [vmem:[#allocation16_spill] sm:$0xff]  ;;  %v1968_v0 = vld [vmem:[#allocation21_spill] sm:$0xff]  ;;  %v1970_v50 = vld [vmem:[#allocation23_spill] sm:$0xff] }
  0xcb   :  { %v267_v34 = vmul.f32 %v1114_v40, %v266_v54  ;;  %v279_v51 = vmul.f32 0.0, %v257_v45  ;;  %v1971_v52 = vld [vmem:[#allocation37_spill] sm:$0xff]  ;;  %v1974_v56 = vld [vmem:[#allocation26_spill] sm:$0xff] }
  0xcc   :  { %v1973_v54 = vld [vmem:[#allocation25_spill] sm:$0xff]  ;;  %v1975_v45 = vld [vmem:[#allocation38_spill] sm:$0xff] }
  0xcd   :  { %v1722_v44 = vadd.f32 %v280_v36, %v279_v51  ;;  %v268_v42 = vadd.f32 %v1114_v40, %v267_v34  ;;  %v1959_v34 = vld [vmem:[#allocation28_spill] sm:$0xff]  ;;  %v1960_v36 = vld [vmem:[#allocation15_spill] sm:$0xff] }
  0xce   :  { %v1963_v51 = vld [vmem:[#allocation32_spill] sm:$0xff] }
  0xcf   :  { %1117 = vtanh.f32 %v1722_v44  ;;  %v272_v38 = vsel %vm271_vm10, %v1114_v40, %v268_v42  ;;  %v1962_v40 = vld [vmem:[#allocation17_spill] sm:$0xff]  ;;  %v1976_v42 = vld [vmem:[#allocation27_spill] sm:$0xff] }
  0xd0   :  { %v277_v55 = vsel %vm274_vm11, %v276_v53, %v272_v38  ;;  %v1979_v38 = vld [vmem:[#allocation39_spill] sm:$0xff] }
  0xd1   :  { %v1980_v53 = vld [vmem:[#allocation31_spill] sm:$0xff] }
  0xd5   :  { %v1118_v58 = vpop.eup %1117 }
  0xd6   :  { %v283_v41 = vmul.f32 %v1118_v58, %v277_v55  ;;  %v1981_v58 = vld [vmem:[#allocation33_spill] sm:$0xff]  ;;  %v1982_v55 = vld [vmem:[#allocation34_spill] sm:$0xff] }
  0xd8   :  { %284 = vst [vmem:[#allocation10] sm:$0xff] %v283_v41  ;;  %306 = vmatmul.f32.vlgmr.msrb.gmra.mxu0 %v283_v41  ;;  %326 = vmatmul.f32.vlgmr.msrb.gmra.mxu1 %v283_v41 }
  0xd9   :  { %346 = vmatmul.f32.vlgmr.msrb.gmra.mxu2 %v283_v41  ;;  %366 = vmatmul.f32.vlgmr.msrb.gmra.mxu3 %v283_v41  ;;  %v1983_v41 = vld [vmem:[#allocation40_spill] sm:$0xff] }
  0xda   :  { %598 = vmatpush.msrb.mxu0 %v1958_v59  ;;  %618 = vmatpush.msrb.mxu1 %v1404_v1 }
  0xdb   :  { %638 = vmatpush.msrb.mxu2 %v1448_v17  ;;  %658 = vmatpush.msrb.mxu3 %v1406_v2 }
  0xdc   :  { %599 = vmatpush.msrb.mxu0 %v1410_v3  ;;  %619 = vmatpush.msrb.mxu1 %v1412_v4 }
  0xdd   :  { %639 = vmatpush.msrb.mxu2 %v1454_v19  ;;  %659 = vmatpush.msrb.mxu3 %v1414_v5 }
  0xde   :  { %600 = vmatpush.msrb.mxu0 %v1417_v6  ;;  %620 = vmatpush.msrb.mxu1 %v1419_v7 }
  0xdf   :  { %640 = vmatpush.msrb.mxu2 %v1466_v23  ;;  %660 = vmatpush.msrb.mxu3 %v1423_v8 }
  0xe0   :  { %601 = vmatpush.msrb.mxu0 %v1426_v9  ;;  %621 = vmatpush.msrb.mxu1 %v1428_v10 }
  0xe1   :  { %641 = vmatpush.msrb.mxu2 %v1478_v27  ;;  %661 = vmatpush.msrb.mxu3 %v1432_v11 }
  0xe2   :  { %602 = vmatpush.msrb.mxu0 %v1435_v12  ;;  %622 = vmatpush.msrb.mxu1 %v1437_v13 }
  0xe3   :  { %642 = vmatpush.msrb.mxu2 %v1490_v31  ;;  %662 = vmatpush.msrb.mxu3 %v1441_v14 }
  0xe4   :  { %603 = vmatpush.msrb.mxu0 %v1444_v15  ;;  %623 = vmatpush.msrb.mxu1 %v1446_v16 }
  0xe5   :  { %643 = vmatpush.msrb.mxu2 %v1502_v35  ;;  %663 = vmatpush.msrb.mxu3 %v1452_v18 }
  0xe6   :  { %604 = vmatpush.msrb.mxu0 %v1457_v20  ;;  %624 = vmatpush.msrb.mxu1 %v1459_v21 }
  0xe7   :  { %644 = vmatpush.msrb.mxu2 %v1514_v39  ;;  %664 = vmatpush.msrb.mxu3 %v1464_v22 }
  0xe8   :  { %605 = vmatpush.msrb.mxu0 %v1469_v24  ;;  %625 = vmatpush.msrb.mxu1 %v1471_v25 }
  0xe9   :  { %645 = vmatpush.msrb.mxu2 %v1526_v43  ;;  %665 = vmatpush.msrb.mxu3 %v1476_v26 }
  0xea   :  { %606 = vmatpush.msrb.mxu0 %v1481_v28  ;;  %626 = vmatpush.msrb.mxu1 %v1483_v29 }
  0xeb   :  { %646 = vmatpush.msrb.mxu2 %v1538_v47  ;;  %666 = vmatpush.msrb.mxu3 %v1488_v30 }
  0xec   :  { %607 = vmatpush.msrb.mxu0 %v1493_v32  ;;  %627 = vmatpush.msrb.mxu1 %v1495_v33 }
  0xed   :  { %647 = vmatpush.msrb.mxu2 %v1959_v34  ;;  %667 = vmatpush.msrb.mxu3 %v1960_v36 }
  0xee   :  { %608 = vmatpush.msrb.mxu0 %v1961_v37  ;;  %628 = vmatpush.msrb.mxu1 %v1962_v40 }
  0xef   :  { %648 = vmatpush.msrb.mxu2 %v1963_v51  ;;  %668 = vmatpush.msrb.mxu3 %v1964_v49 }
  0xf0   :  { %609 = vmatpush.msrb.mxu0 %v1965_v48  ;;  %629 = vmatpush.msrb.mxu1 %v1966_v61 }
  0xf1   :  { %649 = vmatpush.msrb.mxu2 %v1967_v62  ;;  %669 = vmatpush.msrb.mxu3 %v1968_v0 }
  0xf2   :  { %610 = vmatpush.msrb.mxu0 %v1969_v60  ;;  %630 = vmatpush.msrb.mxu1 %v1970_v50 }
  0xf3   :  { %650 = vmatpush.msrb.mxu2 %v1971_v52  ;;  %670 = vmatpush.msrb.mxu3 %v1972_v46 }
  0xf4   :  { %611 = vmatpush.msrb.mxu0 %v1973_v54  ;;  %631 = vmatpush.msrb.mxu1 %v1974_v56  ;;  %v1984_v54 = vld [vmem:[#allocation35_spill] sm:$0xff] }
  0xf5   :  { %651 = vmatpush.msrb.mxu2 %v1975_v45  ;;  %671 = vmatpush.msrb.mxu3 %v1976_v42  ;;  %v286_v56 = vld [vmem:[#allocation4 + $0x20] sm:$0xff]  ;;  %v287_v45 = vld [vmem:[#allocation4 + $0x28] sm:$0xff] }
  0xf6   :  { %612 = vmatpush.msrb.mxu0 %v1977_v63  ;;  %632 = vmatpush.msrb.mxu1 %v1978_v57 }
  0xf7   :  { %652 = vmatpush.msrb.mxu2 %v1979_v38  ;;  %672 = vmatpush.msrb.mxu3 %v1980_v53  ;;  %v289_v38 = vld [vmem:[#allocation4 + $0x38] sm:$0xff] }
  0xf8   :  { %613 = vmatpush.msrb.mxu0 %v1981_v58  ;;  %633 = vmatpush.msrb.mxu1 %v1982_v55 }
  0xf9   :  { %653 = vmatpush.msrb.mxu2 %v1983_v41  ;;  %673 = vmatpush.msrb.mxu3 %v1984_v54  ;;  %v288_v54 = vld [vmem:[#allocation4 + $0x30] sm:$0xff] }
 0x155   :  { %v307_v46 = vpop.f32.mrf.mxu0  ;;  %v327_v42 = vpop.f32.mrf.mxu1 }
 0x156   :  { %v370_v52 = vadd.f32 %v307_v46, %v286_v56  ;;  %v371_v63 = vadd.f32 %v327_v42, %v287_v45 }
 0x158   :  { %v1080_v50 = vmul.f32 -1.442695, %v370_v52  ;;  %v1081_v57 = vmul.f32 -1.442695, %v371_v63 }
 0x15a   :  { %1119 = vpow2.f32 %v1080_v50 }
 0x15b   :  { %1121 = vpow2.f32 %v1081_v57 }
 0x15c   :  { %v367_v53 = vpop.f32.mrf.mxu3  ;;  %v347_v61 = vpop.f32.mrf.mxu2 }
 0x15d   :  { %v373_v60 = vadd.f32 %v367_v53, %v289_v38  ;;  %v372_v52 = vadd.f32 %v347_v61, %v288_v54 }
 0x15f   :  { %v1082_v58 = vmul.f32 -1.442695, %v373_v60 }
 0x160   :  { %v1120_v0 = vpop.eup %1119 }
 0x161   :  { %v1122_v55 = vpop.eup %1121  ;;  %v377_v62 = vadd.f32 1.0, %v1120_v0  ;;  %1123 = vpow2.f32 %v1082_v58 }
 0x162   :  { %v396_v41 = vadd.f32 1.0, %v1122_v55 }
 0x163   :  { %1125 = vrcp.f32 %v377_v62  ;;  %v389_v60 = vand.u32 2147483648, %v377_v62  ;;  %v387_v53 = vand.u32 2147483647, %v377_v62  ;;  %vm383_vm14 = vweird.f32 %v377_v62 }
 0x164   :  { %1127 = vrcp.f32 %v396_v41  ;;  %v408_v38 = vand.u32 2147483648, %v396_v41  ;;  %v406_v55 = vand.u32 2147483647, %v396_v41  ;;  %vm402_vm15 = vweird.f32 %v396_v41 }
 0x165   :  { %vm388_vm2 = vcmp.eq.f32.partialorder %v387_v53, 8.507059e+37 }
 0x166   :  { %vm407_vm3 = vcmp.eq.f32.partialorder %v406_v55, 8.507059e+37 }
 0x167   :  { %v1124_v48 = vpop.eup %1123 }
 0x168   :  { %v416_v46 = vadd.f32 1.0, %v1124_v48  ;;  %v390_v48 = vor.u32 1.1754944e-38, %v389_v60 }
 0x169   :  { %v1126_v56 = vpop.eup %1125 }
 0x16a   :  { %v1128_v45 = vpop.eup %1127  ;;  %v379_v50 = vmul.f32 %v1126_v56, %v377_v62  ;;  %1129 = vrcp.f32 %v416_v46  ;;  %vm384_vm12 = vweird.f32 %v1126_v56  ;;  %v428_v60 = vand.u32 2147483648, %v416_v46 }
 0x16b   :  { %v398_v42 = vmul.f32 %v1128_v45, %v396_v41  ;;  %1131 = vtanh.f32 %v372_v52  ;;  %vm403_vm13 = vweird.f32 %v1128_v45  ;;  %vm385_vm0 = vmor %vm383_vm14, %vm384_vm12  ;;  %vm422_vm5 = vweird.f32 %v416_v46 }
 0x16c   :  { %v380_v63 = vsub.f32 1.0, %v379_v50  ;;  %vm404_vm1 = vmor %vm402_vm15, %vm403_vm13  ;;  %v409_v50 = vor.u32 1.1754944e-38, %v408_v38  ;;  %v429_v38 = vor.u32 1.1754944e-38, %v428_v60 }
 0x16d   :  { %v399_v57 = vsub.f32 1.0, %v398_v42 }
 0x16e   :  { %v381_v0 = vmul.f32 %v1126_v56, %v380_v63 }
 0x16f   :  { %v400_v58 = vmul.f32 %v1128_v45, %v399_v57 }
 0x170   :  { %v1130_v49 = vpop.eup %1129  ;;  %v382_v51 = vadd.f32 %v1126_v56, %v381_v0 }
 0x171   :  { %v401_v61 = vadd.f32 %v1128_v45, %v400_v58  ;;  %v418_v54 = vmul.f32 %v1130_v49, %v416_v46  ;;  %v1132_v52 = vpop.eup %1131  ;;  %vm423_vm4 = vweird.f32 %v1130_v49 }
 0x172   :  { %v386_v42 = vsel %vm385_vm0, %v1126_v56, %v382_v51  ;;  %v426_v51 = vand.u32 2147483647, %v416_v46  ;;  %vm424_vm6 = vmor %vm422_vm5, %vm423_vm4 }
 0x173   :  { %v391_v40 = vsel %vm388_vm2, %v390_v48, %v386_v42  ;;  %v405_v63 = vsel %vm404_vm1, %v1128_v45, %v401_v61  ;;  %v419_v37 = vsub.f32 1.0, %v418_v54 }
 0x174   :  { %v410_v57 = vsel %vm407_vm3, %v409_v50, %v405_v63  ;;  %v433_v36 = vmul.f32 %v1132_v52, %v391_v40  ;;  %vm427_vm7 = vcmp.eq.f32.partialorder %v426_v51, 8.507059e+37  ;;  %v442_v40 = vld [vmem:[#allocation4 + $0x50] sm:$0xff] }
 0x175   :  { %v432_v34 = vmul.f32 %v410_v57, %v1722_v44  ;;  %v420_v0 = vmul.f32 %v1130_v49, %v419_v37 }
 0x177   :  { %v1790_v62 = vadd.f32 %v433_v36, %v432_v34  ;;  %v421_v41 = vadd.f32 %v1130_v49, %v420_v0 }
 0x179   :  { %1133 = vtanh.f32 %v1790_v62  ;;  %v425_v56 = vsel %vm424_vm6, %v1130_v49, %v421_v41 }
 0x17a   :  { %v430_v53 = vsel %vm427_vm7, %v429_v38, %v425_v56 }
 0x17f   :  { %v1134_v45 = vpop.eup %1133 }
 0x180   :  { %v436_v58 = vmul.f32 %v1134_v45, %v430_v53 }
 0x182   :  { %438 = vst [vmem:[#allocation10 + $0x8] sm:$0xff] %v436_v58  ;;  %460 = vmatmul.f32.vlgmr.msra.gmra.mxu0 %v436_v58  ;;  %480 = vmatmul.f32.vlgmr.msra.gmra.mxu1 %v436_v58 }
 0x183   :  { %500 = vmatmul.f32.vlgmr.msra.gmra.mxu2 %v436_v58  ;;  %520 = vmatmul.f32.vlgmr.msra.gmra.mxu3 %v436_v58 }
 0x184   :  { %752 = vmatpush.msra.mxu0 %v1958_v59  ;;  %772 = vmatpush.msra.mxu1 %v1404_v1  ;;  %v1985_v1 = vld [vmem:[#allocation28_spill] sm:$0xff] }
 0x185   :  { %792 = vmatpush.msra.mxu2 %v1448_v17  ;;  %812 = vmatpush.msra.mxu3 %v1406_v2  ;;  %v1986_v2 = vld [vmem:[#allocation15_spill] sm:$0xff]  ;;  %v2001_v17 = vld [vmem:[#allocation38_spill] sm:$0xff] }
 0x186   :  { %753 = vmatpush.msra.mxu0 %v1410_v3  ;;  %773 = vmatpush.msra.mxu1 %v1412_v4  ;;  %v1987_v3 = vld [vmem:[#allocation16_spill] sm:$0xff]  ;;  %v1988_v4 = vld [vmem:[#allocation17_spill] sm:$0xff] }
 0x187   :  { %793 = vmatpush.msra.mxu2 %v1454_v19  ;;  %813 = vmatpush.msra.mxu3 %v1414_v5  ;;  %v1989_v5 = vld [vmem:[#allocation32_spill] sm:$0xff]  ;;  %v2003_v19 = vld [vmem:[#allocation29_spill] sm:$0xff] }
 0x188   :  { %754 = vmatpush.msra.mxu0 %v1417_v6  ;;  %774 = vmatpush.msra.mxu1 %v1419_v7  ;;  %v1990_v6 = vld [vmem:[#allocation18_spill] sm:$0xff]  ;;  %v1991_v7 = vld [vmem:[#allocation19_spill] sm:$0xff] }
 0x189   :  { %794 = vmatpush.msra.mxu2 %v1466_v23  ;;  %814 = vmatpush.msra.mxu3 %v1423_v8  ;;  %v1992_v8 = vld [vmem:[#allocation20_spill] sm:$0xff]  ;;  %v2007_v23 = vld [vmem:[#allocation33_spill] sm:$0xff] }
 0x18a   :  { %755 = vmatpush.msra.mxu0 %v1426_v9  ;;  %775 = vmatpush.msra.mxu1 %v1428_v10  ;;  %v1993_v9 = vld [vmem:[#allocation36_spill] sm:$0xff]  ;;  %v1994_v10 = vld [vmem:[#allocation21_spill] sm:$0xff] }
 0x18b   :  { %795 = vmatpush.msra.mxu2 %v1478_v27  ;;  %815 = vmatpush.msra.mxu3 %v1432_v11  ;;  %v1995_v11 = vld [vmem:[#allocation22_spill] sm:$0xff]  ;;  %v440_v27 = vld [vmem:[#allocation4 + $0x40] sm:$0xff] }
 0x18c   :  { %756 = vmatpush.msra.mxu0 %v1435_v12  ;;  %776 = vmatpush.msra.mxu1 %v1437_v13  ;;  %v1996_v12 = vld [vmem:[#allocation23_spill] sm:$0xff]  ;;  %v1997_v13 = vld [vmem:[#allocation37_spill] sm:$0xff] }
 0x18d   :  { %796 = vmatpush.msra.mxu2 %v1490_v31  ;;  %816 = vmatpush.msra.mxu3 %v1441_v14  ;;  %v1998_v14 = vld [vmem:[#allocation24_spill] sm:$0xff] }
 0x18e   :  { %757 = vmatpush.msra.mxu0 %v1444_v15  ;;  %777 = vmatpush.msra.mxu1 %v1446_v16  ;;  %v1999_v15 = vld [vmem:[#allocation25_spill] sm:$0xff]  ;;  %v2000_v16 = vld [vmem:[#allocation26_spill] sm:$0xff] }
 0x18f   :  { %797 = vmatpush.msra.mxu2 %v1502_v35  ;;  %817 = vmatpush.msra.mxu3 %v1452_v18  ;;  %v2002_v18 = vld [vmem:[#allocation27_spill] sm:$0xff] }
 0x190   :  { %758 = vmatpush.msra.mxu0 %v1457_v20  ;;  %778 = vmatpush.msra.mxu1 %v1459_v21  ;;  %v2004_v20 = vld [vmem:[#allocation30_spill] sm:$0xff]  ;;  %v2005_v21 = vld [vmem:[#allocation39_spill] sm:$0xff] }
 0x191   :  { %798 = vmatpush.msra.mxu2 %v1514_v39  ;;  %818 = vmatpush.msra.mxu3 %v1464_v22  ;;  %v2006_v22 = vld [vmem:[#allocation31_spill] sm:$0xff]  ;;  %v443_v39 = vld [vmem:[#allocation4 + $0x58] sm:$0xff] }
 0x192   :  { %759 = vmatpush.msra.mxu0 %v1469_v24  ;;  %779 = vmatpush.msra.mxu1 %v1471_v25  ;;  %v2008_v24 = vld [vmem:[#allocation34_spill] sm:$0xff]  ;;  %v2009_v25 = vld [vmem:[#allocation40_spill] sm:$0xff] }
 0x193   :  { %799 = vmatpush.msra.mxu2 %v1526_v43  ;;  %819 = vmatpush.msra.mxu3 %v1476_v26  ;;  %v2010_v26 = vld [vmem:[#allocation35_spill] sm:$0xff] }
 0x194   :  { %760 = vmatpush.msra.mxu0 %v1481_v28  ;;  %780 = vmatpush.msra.mxu1 %v1483_v29  ;;  %v441_v28 = vld [vmem:[#allocation4 + $0x48] sm:$0xff] }
 0x195   :  { %800 = vmatpush.msra.mxu2 %v1538_v47  ;;  %820 = vmatpush.msra.mxu3 %v1488_v30 }
 0x196   :  { %761 = vmatpush.msra.mxu0 %v1493_v32  ;;  %781 = vmatpush.msra.mxu1 %v1495_v33 }
 0x197   :  { %801 = vmatpush.msra.mxu2 %v1985_v1  ;;  %821 = vmatpush.msra.mxu3 %v1986_v2 }
 0x198   :  { %762 = vmatpush.msra.mxu0 %v1987_v3  ;;  %782 = vmatpush.msra.mxu1 %v1988_v4 }
 0x199   :  { %802 = vmatpush.msra.mxu2 %v1989_v5  ;;  %822 = vmatpush.msra.mxu3 %v1990_v6 }
 0x19a   :  { %763 = vmatpush.msra.mxu0 %v1991_v7  ;;  %783 = vmatpush.msra.mxu1 %v1992_v8 }
 0x19b   :  { %803 = vmatpush.msra.mxu2 %v1993_v9  ;;  %823 = vmatpush.msra.mxu3 %v1994_v10 }
 0x19c   :  { %764 = vmatpush.msra.mxu0 %v1995_v11  ;;  %784 = vmatpush.msra.mxu1 %v1996_v12 }
 0x19d   :  { %804 = vmatpush.msra.mxu2 %v1997_v13  ;;  %824 = vmatpush.msra.mxu3 %v1998_v14 }
 0x19e   :  { %765 = vmatpush.msra.mxu0 %v1999_v15  ;;  %785 = vmatpush.msra.mxu1 %v2000_v16 }
 0x19f   :  { %805 = vmatpush.msra.mxu2 %v2001_v17  ;;  %825 = vmatpush.msra.mxu3 %v2002_v18 }
 0x1a0   :  { %766 = vmatpush.msra.mxu0 %v2003_v19  ;;  %786 = vmatpush.msra.mxu1 %v2004_v20 }
 0x1a1   :  { %806 = vmatpush.msra.mxu2 %v2005_v21  ;;  %826 = vmatpush.msra.mxu3 %v2006_v22  ;;  %v1200_v21 = vld [vmem:[#allocation9 + $0x1e8] sm:$0xff]  ;;  %v1201_v22 = vld [vmem:[#allocation9 + $0x1f0] sm:$0xff] }
 0x1a2   :  { %767 = vmatpush.msra.mxu0 %v2007_v23  ;;  %787 = vmatpush.msra.mxu1 %v2008_v24  ;;  %v1202_v23 = vld [vmem:[#allocation9 + $0x1f8] sm:$0xff]  ;;  %v1203_v24 = vld [vmem:[#allocation9 + $0x1c0] sm:$0xff] }
 0x1a3   :  { %807 = vmatpush.msra.mxu2 %v2009_v25  ;;  %827 = vmatpush.msra.mxu3 %v2010_v26  ;;  %v1204_v25 = vld [vmem:[#allocation9 + $0x1c8] sm:$0xff]  ;;  %v1205_v26 = vld [vmem:[#allocation9 + $0x1d0] sm:$0xff] }
 0x1ff   :  { %v461_v29 = vpop.f32.mrf.mxu0  ;;  %v481_v30 = vpop.f32.mrf.mxu1 }
 0x200   :  { %v524_v31 = vadd.f32 %v461_v29, %v440_v27  ;;  %v525_v32 = vadd.f32 %v481_v30, %v441_v28  ;;  %v1206_v27 = vld [vmem:[#allocation9 + $0x1d8] sm:$0xff]  ;;  %v1207_v28 = vld [vmem:[#allocation9 + $0x1a0] sm:$0xff]  ;;  %v1208_v29 = vld [vmem:[#allocation9 + $0x1a8] sm:$0xff] }
 0x201   :  { %v1209_v30 = vld [vmem:[#allocation9 + $0x1b0] sm:$0xff] }
 0x202   :  { %v1083_v33 = vmul.f32 -1.442695, %v524_v31  ;;  %v1084_v35 = vmul.f32 -1.442695, %v525_v32  ;;  %v1210_v31 = vld [vmem:[#allocation9 + $0x1b8] sm:$0xff]  ;;  %v1211_v32 = vld [vmem:[#allocation9 + $0x180] sm:$0xff] }
 0x204   :  { %1135 = vpow2.f32 %v1083_v33  ;;  %v1212_v33 = vld [vmem:[#allocation9 + $0x188] sm:$0xff] }
 0x205   :  { %1137 = vpow2.f32 %v1084_v35  ;;  %v1213_v35 = vld [vmem:[#allocation9 + $0x190] sm:$0xff] }
 0x206   :  { %v521_v43 = vpop.f32.mrf.mxu3  ;;  %v501_v49 = vpop.f32.mrf.mxu2 }
 0x207   :  { %v527_v47 = vadd.f32 %v521_v43, %v443_v39  ;;  %v526_v61 = vadd.f32 %v501_v49, %v442_v40  ;;  %v1214_v39 = vld [vmem:[#allocation9 + $0x198] sm:$0xff]  ;;  %v1215_v43 = vld [vmem:[#allocation9 + $0x160] sm:$0xff] }
 0x208   :  { %v1222_v40 = vld [vmem:[#allocation9 + $0x158] sm:$0xff]  ;;  %v1223_v49 = vld [vmem:[#allocation9 + $0x120] sm:$0xff] }
 0x209   :  { %v1085_v59 = vmul.f32 -1.442695, %v527_v47  ;;  %v1216_v47 = vld [vmem:[#allocation9 + $0x168] sm:$0xff] }
 0x20a   :  { %v1136_v44 = vpop.eup %1135 }
 0x20b   :  { %v1138_v34 = vpop.eup %1137  ;;  %v531_v36 = vadd.f32 1.0, %v1136_v44  ;;  %1139 = vpow2.f32 %v1085_v59  ;;  %v1217_v59 = vld [vmem:[#allocation9 + $0x170] sm:$0xff]  ;;  %v1218_v44 = vld [vmem:[#allocation9 + $0x178] sm:$0xff] }
 0x20c   :  { %v550_v37 = vadd.f32 1.0, %v1138_v34  ;;  %v1219_v34 = vld [vmem:[#allocation9 + $0x140] sm:$0xff] }
 0x20d   :  { %1141 = vrcp.f32 %v531_v36  ;;  %v543_v57 = vand.u32 2147483648, %v531_v36  ;;  %v541_v60 = vand.u32 2147483647, %v531_v36  ;;  %vm537_vm10 = vweird.f32 %v531_v36 }
 0x20e   :  { %1143 = vrcp.f32 %v550_v37  ;;  %v562_v0 = vand.u32 2147483648, %v550_v37  ;;  %v560_v56 = vand.u32 2147483647, %v550_v37  ;;  %vm556_vm11 = vweird.f32 %v550_v37 }
 0x20f   :  { %v544_v53 = vor.u32 1.1754944e-38, %v543_v57  ;;  %vm542_vm14 = vcmp.eq.f32.partialorder %v541_v60, 8.507059e+37  ;;  %v1233_v57 = vld [vmem:[#allocation9 + $0xf0] sm:$0xff]  ;;  %v1236_v60 = vld [vmem:[#allocation9 + $0xc8] sm:$0xff] }
 0x210   :  { %v563_v2 = vor.u32 1.1754944e-38, %v562_v0  ;;  %vm561_vm15 = vcmp.eq.f32.partialorder %v560_v56, 8.507059e+37  ;;  %v1234_v0 = vld [vmem:[#allocation9 + $0xf8] sm:$0xff] }
 0x211   :  { %v1140_v46 = vpop.eup %1139  ;;  %v1238_v56 = vld [vmem:[#allocation9 + $0xd8] sm:$0xff] }
 0x212   :  { %v570_v55 = vadd.f32 1.0, %v1140_v46  ;;  %v1224_v46 = vld [vmem:[#allocation9 + $0x128] sm:$0xff] }
 0x213   :  { %v1142_v48 = vpop.eup %1141 }
 0x214   :  { %v1144_v54 = vpop.eup %1143  ;;  %v533_v50 = vmul.f32 %v1142_v48, %v531_v36  ;;  %1145 = vrcp.f32 %v570_v55  ;;  %vm538_vm8 = vweird.f32 %v1142_v48  ;;  %v582_v14 = vand.u32 2147483648, %v570_v55  ;;  %v1220_v36 = vld [vmem:[#allocation9 + $0x148] sm:$0xff] }
 0x215   :  { %v552_v42 = vmul.f32 %v1144_v54, %v550_v37  ;;  %1147 = vtanh.f32 %v526_v61  ;;  %vm557_vm9 = vweird.f32 %v1144_v54  ;;  %vm539_vm12 = vmor %vm537_vm10, %vm538_vm8  ;;  %vm576_vm1 = vweird.f32 %v570_v55  ;;  %v1221_v37 = vld [vmem:[#allocation9 + $0x150] sm:$0xff]  ;;  %v1227_v61 = vld [vmem:[#allocation9 + $0x100] sm:$0xff] }
 0x216   :  { %v534_v52 = vsub.f32 1.0, %v533_v50  ;;  %vm558_vm13 = vmor %vm556_vm11, %vm557_vm9  ;;  %v580_v15 = vand.u32 2147483647, %v570_v55  ;;  %v583_v17 = vor.u32 1.1754944e-38, %v582_v14  ;;  %v1229_v50 = vld [vmem:[#allocation9 + $0x110] sm:$0xff]  ;;  %v1255_v14 = vld [vmem:[#allocation9 + $0x20] sm:$0xff] }
 0x217   :  { %v553_v63 = vsub.f32 1.0, %v552_v42  ;;  %v1230_v42 = vld [vmem:[#allocation9 + $0x118] sm:$0xff] }
 0x218   :  { %v535_v41 = vmul.f32 %v1142_v48, %v534_v52  ;;  %vm581_vm3 = vcmp.eq.f32.partialorder %v580_v15, 8.507059e+37  ;;  %v1231_v52 = vld [vmem:[#allocation9 + $0xe0] sm:$0xff]  ;;  %v1256_v15 = vld [vmem:[#allocation9 + $0x28] sm:$0xff] }
 0x219   :  { %v554_v51 = vmul.f32 %v1144_v54, %v553_v63  ;;  %v1232_v63 = vld [vmem:[#allocation9 + $0xe8] sm:$0xff] }
 0x21a   :  { %v1146_v38 = vpop.eup %1145  ;;  %v536_v45 = vadd.f32 %v1142_v48, %v535_v41  ;;  %v1235_v41 = vld [vmem:[#allocation9 + $0xc0] sm:$0xff] }
 0x21b   :  { %v555_v58 = vadd.f32 %v1144_v54, %v554_v51  ;;  %v572_v1 = vmul.f32 %v1146_v38, %v570_v55  ;;  %v1148_v4 = vpop.eup %1147  ;;  %vm577_vm0 = vweird.f32 %v1146_v38  ;;  %v1225_v55 = vld [vmem:[#allocation9 + $0x130] sm:$0xff] }
 0x21c   :  { %v540_v3 = vsel %vm539_vm12, %v1142_v48, %v536_v45  ;;  %vm578_vm2 = vmor %vm576_vm1, %vm577_vm0  ;;  %v1226_v48 = vld [vmem:[#allocation9 + $0x138] sm:$0xff]  ;;  %v1237_v51 = vld [vmem:[#allocation9 + $0xd0] sm:$0xff] }
 0x21d   :  { %v545_v5 = vsel %vm542_vm14, %v544_v53, %v540_v3  ;;  %v559_v6 = vsel %vm558_vm13, %v1144_v54, %v555_v58  ;;  %v573_v7 = vsub.f32 1.0, %v572_v1  ;;  %v1228_v54 = vld [vmem:[#allocation9 + $0x108] sm:$0xff]  ;;  %v1241_v53 = vld [vmem:[#allocation9 + $0xb0] sm:$0xff]  ;;  %v1242_v58 = vld [vmem:[#allocation9 + $0xb8] sm:$0xff] }
 0x21e   :  { %v564_v8 = vsel %vm561_vm15, %v563_v2, %v559_v6  ;;  %v587_v9 = vmul.f32 %v1148_v4, %v545_v5  ;;  %v1240_v45 = vld [vmem:[#allocation9 + $0xa8] sm:$0xff]  ;;  %v1243_v1 = vld [vmem:[#allocation9 + $0x80] sm:$0xff]  ;;  %v1245_v3 = vld [vmem:[#allocation9 + $0x90] sm:$0xff] }
 0x21f   :  { %v586_v10 = vmul.f32 %v564_v8, %v1790_v62  ;;  %v574_v11 = vmul.f32 %v1146_v38, %v573_v7  ;;  %v1199_v62 = vld [vmem:[#allocation9 + $0x1e0] sm:$0xff]  ;;  %v1244_v2 = vld [vmem:[#allocation9 + $0x88] sm:$0xff]  ;;  %v1246_v4 = vld [vmem:[#allocation9 + $0x98] sm:$0xff] }
 0x220   :  { %v1247_v5 = vld [vmem:[#allocation9 + $0x60] sm:$0xff]  ;;  %v1248_v6 = vld [vmem:[#allocation9 + $0x68] sm:$0xff]  ;;  %v1249_v7 = vld [vmem:[#allocation9 + $0x70] sm:$0xff] }
 0x221   :  { %v1858_v12 = vadd.f32 %v587_v9, %v586_v10  ;;  %v575_v13 = vadd.f32 %v1146_v38, %v574_v11  ;;  %v1250_v8 = vld [vmem:[#allocation9 + $0x78] sm:$0xff]  ;;  %v1251_v9 = vld [vmem:[#allocation9 + $0x40] sm:$0xff]  ;;  %v1252_v10 = vld [vmem:[#allocation9 + $0x48] sm:$0xff] }
 0x222   :  { %v1253_v11 = vld [vmem:[#allocation9 + $0x50] sm:$0xff] }
 0x223   :  { %1149 = vtanh.f32 %v1858_v12  ;;  %v579_v16 = vsel %vm578_vm2, %v1146_v38, %v575_v13  ;;  %v1239_v38 = vld [vmem:[#allocation9 + $0xa0] sm:$0xff]  ;;  %v1254_v13 = vld [vmem:[#allocation9 + $0x58] sm:$0xff] }
 0x224   :  { %v584_v19 = vsel %vm581_vm3, %v583_v17, %v579_v16  ;;  %v1257_v16 = vld [vmem:[#allocation9 + $0x30] sm:$0xff]  ;;  %v1258_v17 = vld [vmem:[#allocation9 + $0x38] sm:$0xff] }
 0x229   :  { %v1150_v18 = vpop.eup %1149 }
 0x22a   :  { %v590_v20 = vmul.f32 %v1150_v18, %v584_v19  ;;  %v1259_v18 = vld [vmem:[#allocation9] sm:$0xff]  ;;  %v1260_v19 = vld [vmem:[#allocation9 + $0x8] sm:$0xff] }
 0x22c   :  { %592 = vst [vmem:[#allocation10 + $0x10] sm:$0xff] %v590_v20  ;;  %614 = vmatmul.f32.vlgmr.msrb.gmra.mxu0 %v590_v20  ;;  %634 = vmatmul.f32.vlgmr.msrb.gmra.mxu1 %v590_v20 }
 0x22d   :  { %654 = vmatmul.f32.vlgmr.msrb.gmra.mxu2 %v590_v20  ;;  %674 = vmatmul.f32.vlgmr.msrb.gmra.mxu3 %v590_v20  ;;  %v1261_v20 = vld [vmem:[#allocation9 + $0x10] sm:$0xff] }
 0x22e   :  { %906 = vmatpush.msrb.mxu0 %v1199_v62  ;;  %926 = vmatpush.msrb.mxu1 %v1200_v21  ;;  %v1262_v62 = vld [vmem:[#allocation9 + $0x18] sm:$0xff] }
 0x22f   :  { %946 = vmatpush.msrb.mxu2 %v1201_v22  ;;  %966 = vmatpush.msrb.mxu3 %v1202_v23  ;;  %v594_v21 = vld [vmem:[#allocation4 + $0x60] sm:$0xff]  ;;  %v595_v22 = vld [vmem:[#allocation4 + $0x68] sm:$0xff] }
 0x230   :  { %907 = vmatpush.msrb.mxu0 %v1203_v24  ;;  %927 = vmatpush.msrb.mxu1 %v1204_v25 }
 0x231   :  { %947 = vmatpush.msrb.mxu2 %v1205_v26  ;;  %967 = vmatpush.msrb.mxu3 %v1206_v27 }
 0x232   :  { %908 = vmatpush.msrb.mxu0 %v1207_v28  ;;  %928 = vmatpush.msrb.mxu1 %v1208_v29  ;;  %v597_v29 = vld [vmem:[#allocation4 + $0x78] sm:$0xff] }
 0x233   :  { %948 = vmatpush.msrb.mxu2 %v1209_v30  ;;  %968 = vmatpush.msrb.mxu3 %v1210_v31 }
 0x234   :  { %909 = vmatpush.msrb.mxu0 %v1211_v32  ;;  %929 = vmatpush.msrb.mxu1 %v1212_v33 }
 0x235   :  { %949 = vmatpush.msrb.mxu2 %v1213_v35  ;;  %969 = vmatpush.msrb.mxu3 %v1214_v39 }
 0x236   :  { %910 = vmatpush.msrb.mxu0 %v1215_v43  ;;  %930 = vmatpush.msrb.mxu1 %v1216_v47  ;;  %v596_v47 = vld [vmem:[#allocation4 + $0x70] sm:$0xff] }
 0x237   :  { %950 = vmatpush.msrb.mxu2 %v1217_v59  ;;  %970 = vmatpush.msrb.mxu3 %v1218_v44 }
 0x238   :  { %911 = vmatpush.msrb.mxu0 %v1219_v34  ;;  %931 = vmatpush.msrb.mxu1 %v1220_v36 }
 0x239   :  { %951 = vmatpush.msrb.mxu2 %v1221_v37  ;;  %971 = vmatpush.msrb.mxu3 %v1222_v40 }
 0x23a   :  { %912 = vmatpush.msrb.mxu0 %v1223_v49  ;;  %932 = vmatpush.msrb.mxu1 %v1224_v46 }
 0x23b   :  { %952 = vmatpush.msrb.mxu2 %v1225_v55  ;;  %972 = vmatpush.msrb.mxu3 %v1226_v48 }
 0x23c   :  { %913 = vmatpush.msrb.mxu0 %v1227_v61  ;;  %933 = vmatpush.msrb.mxu1 %v1228_v54 }
 0x23d   :  { %953 = vmatpush.msrb.mxu2 %v1229_v50  ;;  %973 = vmatpush.msrb.mxu3 %v1230_v42 }
 0x23e   :  { %914 = vmatpush.msrb.mxu0 %v1231_v52  ;;  %934 = vmatpush.msrb.mxu1 %v1232_v63 }
 0x23f   :  { %954 = vmatpush.msrb.mxu2 %v1233_v57  ;;  %974 = vmatpush.msrb.mxu3 %v1234_v0 }
 0x240   :  { %915 = vmatpush.msrb.mxu0 %v1235_v41  ;;  %935 = vmatpush.msrb.mxu1 %v1236_v60 }
 0x241   :  { %955 = vmatpush.msrb.mxu2 %v1237_v51  ;;  %975 = vmatpush.msrb.mxu3 %v1238_v56 }
 0x242   :  { %916 = vmatpush.msrb.mxu0 %v1239_v38  ;;  %936 = vmatpush.msrb.mxu1 %v1240_v45 }
 0x243   :  { %956 = vmatpush.msrb.mxu2 %v1241_v53  ;;  %976 = vmatpush.msrb.mxu3 %v1242_v58 }
 0x244   :  { %917 = vmatpush.msrb.mxu0 %v1243_v1  ;;  %937 = vmatpush.msrb.mxu1 %v1244_v2 }
 0x245   :  { %957 = vmatpush.msrb.mxu2 %v1245_v3  ;;  %977 = vmatpush.msrb.mxu3 %v1246_v4 }
 0x246   :  { %918 = vmatpush.msrb.mxu0 %v1247_v5  ;;  %938 = vmatpush.msrb.mxu1 %v1248_v6 }
 0x247   :  { %958 = vmatpush.msrb.mxu2 %v1249_v7  ;;  %978 = vmatpush.msrb.mxu3 %v1250_v8 }
 0x248   :  { %919 = vmatpush.msrb.mxu0 %v1251_v9  ;;  %939 = vmatpush.msrb.mxu1 %v1252_v10 }
 0x249   :  { %959 = vmatpush.msrb.mxu2 %v1253_v11  ;;  %979 = vmatpush.msrb.mxu3 %v1254_v13 }
 0x24a   :  { %920 = vmatpush.msrb.mxu0 %v1255_v14  ;;  %940 = vmatpush.msrb.mxu1 %v1256_v15 }
 0x24b   :  { %960 = vmatpush.msrb.mxu2 %v1257_v16  ;;  %980 = vmatpush.msrb.mxu3 %v1258_v17  ;;  %v749_v16 = vld [vmem:[#allocation4 + $0x88] sm:$0xff] }
 0x24c   :  { %921 = vmatpush.msrb.mxu0 %v1259_v18  ;;  %941 = vmatpush.msrb.mxu1 %v1260_v19 }
 0x24d   :  { %961 = vmatpush.msrb.mxu2 %v1261_v20  ;;  %981 = vmatpush.msrb.mxu3 %v1262_v62 }
 0x2a9   :  { %v615_v23 = vpop.f32.mrf.mxu0  ;;  %v635_v24 = vpop.f32.mrf.mxu1 }
 0x2aa   :  { %v678_v25 = vadd.f32 %v615_v23, %v594_v21  ;;  %v679_v26 = vadd.f32 %v635_v24, %v595_v22  ;;  %v751_v22 = vld [vmem:[#allocation4 + $0x98] sm:$0xff] }
 0x2ac   :  { %v1086_v27 = vmul.f32 -1.442695, %v678_v25  ;;  %v1087_v28 = vmul.f32 -1.442695, %v679_v26 }
 0x2ae   :  { %1151 = vpow2.f32 %v1086_v27 }
 0x2af   :  { %1153 = vpow2.f32 %v1087_v28 }
 0x2b0   :  { %v675_v30 = vpop.f32.mrf.mxu3  ;;  %v655_v59 = vpop.f32.mrf.mxu2 }
 0x2b1   :  { %v681_v31 = vadd.f32 %v675_v30, %v597_v29  ;;  %v680_v37 = vadd.f32 %v655_v59, %v596_v47  ;;  %v750_v30 = vld [vmem:[#allocation4 + $0x90] sm:$0xff] }
 0x2b3   :  { %v1088_v32 = vmul.f32 -1.442695, %v681_v31 }
 0x2b4   :  { %v1152_v33 = vpop.eup %1151 }
 0x2b5   :  { %v1154_v35 = vpop.eup %1153  ;;  %v685_v39 = vadd.f32 1.0, %v1152_v33  ;;  %1155 = vpow2.f32 %v1088_v32 }
 0x2b6   :  { %v704_v43 = vadd.f32 1.0, %v1154_v35 }
 0x2b7   :  { %1157 = vrcp.f32 %v685_v39  ;;  %v697_v61 = vand.u32 2147483648, %v685_v39  ;;  %v695_v42 = vand.u32 2147483647, %v685_v39  ;;  %vm691_vm6 = vweird.f32 %v685_v39 }
 0x2b8   :  { %1159 = vrcp.f32 %v704_v43  ;;  %v716_v54 = vand.u32 2147483648, %v704_v43  ;;  %v714_v63 = vand.u32 2147483647, %v704_v43  ;;  %vm710_vm7 = vweird.f32 %v704_v43 }
 0x2b9   :  { %v698_v41 = vor.u32 1.1754944e-38, %v697_v61  ;;  %vm696_vm10 = vcmp.eq.f32.partialorder %v695_v42, 8.507059e+37 }
 0x2ba   :  { %v717_v56 = vor.u32 1.1754944e-38, %v716_v54  ;;  %vm715_vm11 = vcmp.eq.f32.partialorder %v714_v63, 8.507059e+37 }
 0x2bb   :  { %v1156_v44 = vpop.eup %1155 }
 0x2bc   :  { %v724_v34 = vadd.f32 1.0, %v1156_v44 }
 0x2bd   :  { %v1158_v36 = vpop.eup %1157 }
 0x2be   :  { %v1160_v40 = vpop.eup %1159  ;;  %v687_v49 = vmul.f32 %v1158_v36, %v685_v39  ;;  %1161 = vrcp.f32 %v724_v34  ;;  %vm692_vm4 = vweird.f32 %v1158_v36  ;;  %v736_v8 = vand.u32 2147483648, %v724_v34 }
 0x2bf   :  { %v706_v46 = vmul.f32 %v1160_v40, %v704_v43  ;;  %1163 = vtanh.f32 %v680_v37  ;;  %vm711_vm5 = vweird.f32 %v1160_v40  ;;  %vm693_vm8 = vmor %vm691_vm6, %vm692_vm4  ;;  %vm730_vm13 = vweird.f32 %v724_v34 }
 0x2c0   :  { %v688_v55 = vsub.f32 1.0, %v687_v49  ;;  %vm712_vm9 = vmor %vm710_vm7, %vm711_vm5  ;;  %v734_v9 = vand.u32 2147483647, %v724_v34  ;;  %v737_v11 = vor.u32 1.1754944e-38, %v736_v8 }
 0x2c1   :  { %v707_v48 = vsub.f32 1.0, %v706_v46 }
 0x2c2   :  { %v689_v50 = vmul.f32 %v1158_v36, %v688_v55  ;;  %vm735_vm15 = vcmp.eq.f32.partialorder %v734_v9, 8.507059e+37  ;;  %v903_v9 = vld [vmem:[#allocation4 + $0xa8] sm:$0xff] }
 0x2c3   :  { %v708_v52 = vmul.f32 %v1160_v40, %v707_v48 }
 0x2c4   :  { %v1162_v57 = vpop.eup %1161  ;;  %v690_v0 = vadd.f32 %v1158_v36, %v689_v50 }
 0x2c5   :  { %v709_v60 = vadd.f32 %v1160_v40, %v708_v52  ;;  %v726_v51 = vmul.f32 %v1162_v57, %v724_v34  ;;  %v1164_v45 = vpop.eup %1163  ;;  %vm731_vm12 = vweird.f32 %v1162_v57 }
 0x2c6   :  { %v694_v38 = vsel %vm693_vm8, %v1158_v36, %v690_v0  ;;  %vm732_vm14 = vmor %vm730_vm13, %vm731_vm12 }
 0x2c7   :  { %v699_v53 = vsel %vm696_vm10, %v698_v41, %v694_v38  ;;  %v713_v58 = vsel %vm712_vm9, %v1160_v40, %v709_v60  ;;  %v727_v1 = vsub.f32 1.0, %v726_v51 }
 0x2c8   :  { %v718_v2 = vsel %vm715_vm11, %v717_v56, %v713_v58  ;;  %v741_v3 = vmul.f32 %v1164_v45, %v699_v53 }
 0x2c9   :  { %v740_v4 = vmul.f32 %v718_v2, %v1858_v12  ;;  %v728_v5 = vmul.f32 %v1162_v57, %v727_v1  ;;  %v748_v12 = vld [vmem:[#allocation4 + $0x80] sm:$0xff] }
 0x2cb   :  { %v1862_v6 = vadd.f32 %v741_v3, %v740_v4  ;;  %v729_v7 = vadd.f32 %v1162_v57, %v728_v5 }
 0x2cd   :  { %1165 = vtanh.f32 %v1862_v6  ;;  %v733_v10 = vsel %vm732_vm14, %v1162_v57, %v729_v7 }
 0x2ce   :  { %v738_v14 = vsel %vm735_vm15, %v737_v11, %v733_v10 }
 0x2d3   :  { %v1166_v13 = vpop.eup %1165 }
 0x2d4   :  { %v744_v15 = vmul.f32 %v1166_v13, %v738_v14 }
 0x2d6   :  { %746 = vst [vmem:[#allocation10 + $0x18] sm:$0xff] %v744_v15  ;;  %768 = vmatmul.f32.vlgmr.msra.gmra.mxu0 %v744_v15  ;;  %788 = vmatmul.f32.vlgmr.msra.gmra.mxu1 %v744_v15 }
 0x2d7   :  { %808 = vmatmul.f32.vlgmr.msra.gmra.mxu2 %v744_v15  ;;  %828 = vmatmul.f32.vlgmr.msra.gmra.mxu3 %v744_v15 }
 0x353   :  { %v769_v17 = vpop.f32.mrf.mxu0  ;;  %v789_v18 = vpop.f32.mrf.mxu1 }
 0x354   :  { %v832_v19 = vadd.f32 %v769_v17, %v748_v12  ;;  %v833_v20 = vadd.f32 %v789_v18, %v749_v16  ;;  %v905_v16 = vld [vmem:[#allocation4 + $0xb8] sm:$0xff] }
 0x356   :  { %v1089_v62 = vmul.f32 -1.442695, %v832_v19  ;;  %v1090_v21 = vmul.f32 -1.442695, %v833_v20 }
 0x358   :  { %1167 = vpow2.f32 %v1089_v62 }
 0x359   :  { %1169 = vpow2.f32 %v1090_v21 }
 0x35a   :  { %v829_v23 = vpop.f32.mrf.mxu3  ;;  %v809_v31 = vpop.f32.mrf.mxu2 }
 0x35b   :  { %v835_v24 = vadd.f32 %v829_v23, %v751_v22  ;;  %v834_v39 = vadd.f32 %v809_v31, %v750_v30  ;;  %v904_v23 = vld [vmem:[#allocation4 + $0xb0] sm:$0xff] }
 0x35d   :  { %v1091_v25 = vmul.f32 -1.442695, %v835_v24 }
 0x35e   :  { %v1168_v26 = vpop.eup %1167 }
 0x35f   :  { %v1170_v27 = vpop.eup %1169  ;;  %v839_v28 = vadd.f32 1.0, %v1168_v26  ;;  %1171 = vpow2.f32 %v1091_v25 }
 0x360   :  { %v858_v29 = vadd.f32 1.0, %v1170_v27 }
 0x361   :  { %1173 = vrcp.f32 %v839_v28  ;;  %v851_v36 = vand.u32 2147483648, %v839_v28  ;;  %v849_v49 = vand.u32 2147483647, %v839_v28  ;;  %vm845_vm2 = vweird.f32 %v839_v28 }
 0x362   :  { %1175 = vrcp.f32 %v858_v29  ;;  %v870_v37 = vand.u32 2147483648, %v858_v29  ;;  %v868_v55 = vand.u32 2147483647, %v858_v29  ;;  %vm864_vm3 = vweird.f32 %v858_v29 }
 0x363   :  { %v852_v54 = vor.u32 1.1754944e-38, %v851_v36  ;;  %vm850_vm6 = vcmp.eq.f32.partialorder %v849_v49, 8.507059e+37 }
 0x364   :  { %v871_v52 = vor.u32 1.1754944e-38, %v870_v37  ;;  %vm869_vm7 = vcmp.eq.f32.partialorder %v868_v55, 8.507059e+37 }
 0x365   :  { %v1172_v32 = vpop.eup %1171 }
 0x366   :  { %v878_v33 = vadd.f32 1.0, %v1172_v32 }
 0x367   :  { %v1174_v35 = vpop.eup %1173 }
 0x368   :  { %v1176_v43 = vpop.eup %1175  ;;  %v841_v47 = vmul.f32 %v1174_v35, %v839_v28  ;;  %1177 = vrcp.f32 %v878_v33  ;;  %vm846_vm0 = vweird.f32 %v1174_v35  ;;  %v890_v1 = vand.u32 2147483648, %v878_v33 }
 0x369   :  { %v860_v59 = vmul.f32 %v1176_v43, %v858_v29  ;;  %1179 = vtanh.f32 %v834_v39  ;;  %vm865_vm1 = vweird.f32 %v1176_v43  ;;  %vm847_vm4 = vmor %vm845_vm2, %vm846_vm0  ;;  %vm884_vm9 = vweird.f32 %v878_v33 }
 0x36a   :  { %v842_v44 = vsub.f32 1.0, %v841_v47  ;;  %vm866_vm5 = vmor %vm864_vm3, %vm865_vm1  ;;  %v888_v2 = vand.u32 2147483647, %v878_v33  ;;  %v891_v4 = vor.u32 1.1754944e-38, %v890_v1 }
 0x36b   :  { %v861_v34 = vsub.f32 1.0, %v860_v59 }
 0x36c   :  { %v843_v40 = vmul.f32 %v1174_v35, %v842_v44  ;;  %vm889_vm11 = vcmp.eq.f32.partialorder %v888_v2, 8.507059e+37 }
 0x36d   :  { %v862_v46 = vmul.f32 %v1176_v43, %v861_v34 }
 0x36e   :  { %v1178_v48 = vpop.eup %1177  ;;  %v844_v61 = vadd.f32 %v1174_v35, %v843_v40 }
 0x36f   :  { %v863_v50 = vadd.f32 %v1176_v43, %v862_v46  ;;  %v880_v42 = vmul.f32 %v1178_v48, %v878_v33  ;;  %v1180_v57 = vpop.eup %1179  ;;  %vm885_vm8 = vweird.f32 %v1178_v48 }
 0x370   :  { %v848_v63 = vsel %vm847_vm4, %v1174_v35, %v844_v61  ;;  %vm886_vm10 = vmor %vm884_vm9, %vm885_vm8 }
 0x371   :  { %v853_v0 = vsel %vm850_vm6, %v852_v54, %v848_v63  ;;  %v867_v41 = vsel %vm866_vm5, %v1176_v43, %v863_v50  ;;  %v881_v60 = vsub.f32 1.0, %v880_v42 }
 0x372   :  { %v872_v51 = vsel %vm869_vm7, %v871_v52, %v867_v41  ;;  %v895_v56 = vmul.f32 %v1180_v57, %v853_v0 }
 0x373   :  { %v894_v38 = vmul.f32 %v872_v51, %v1862_v6  ;;  %v882_v45 = vmul.f32 %v1178_v48, %v881_v60  ;;  %v902_v6 = vld [vmem:[#allocation4 + $0xa0] sm:$0xff] }
 0x375   :  { %v1866_v53 = vadd.f32 %v895_v56, %v894_v38  ;;  %v883_v58 = vadd.f32 %v1178_v48, %v882_v45 }
 0x377   :  { %1181 = vtanh.f32 %v1866_v53  ;;  %v887_v3 = vsel %vm886_vm10, %v1178_v48, %v883_v58 }
 0x378   :  { %v892_v7 = vsel %vm889_vm11, %v891_v4, %v887_v3 }
 0x37d   :  { %v1182_v5 = vpop.eup %1181 }
 0x37e   :  { %v898_v8 = vmul.f32 %v1182_v5, %v892_v7 }
 0x380   :  { %900 = vst [vmem:[#allocation10 + $0x20] sm:$0xff] %v898_v8  ;;  %922 = vmatmul.f32.vlgmr.msrb.gmra.mxu0 %v898_v8  ;;  %942 = vmatmul.f32.vlgmr.msrb.gmra.mxu1 %v898_v8 }
 0x381   :  { %962 = vmatmul.f32.vlgmr.msrb.gmra.mxu2 %v898_v8  ;;  %982 = vmatmul.f32.vlgmr.msrb.gmra.mxu3 %v898_v8 }
 0x3fd   :  { %v923_v10 = vpop.f32.mrf.mxu0  ;;  %v943_v11 = vpop.f32.mrf.mxu1 }
 0x3fe   :  { %v986_v13 = vadd.f32 %v923_v10, %v902_v6  ;;  %v987_v14 = vadd.f32 %v943_v11, %v903_v9 }
 0x400   :  { %v1092_v15 = vmul.f32 -1.442695, %v986_v13  ;;  %v1093_v12 = vmul.f32 -1.442695, %v987_v14 }
 0x402   :  { %1183 = vpow2.f32 %v1092_v15 }
 0x403   :  { %1185 = vpow2.f32 %v1093_v12 }
 0x404   :  { %v983_v17 = vpop.f32.mrf.mxu3  ;;  %v963_v24 = vpop.f32.mrf.mxu2 }
 0x405   :  { %v989_v18 = vadd.f32 %v983_v17, %v905_v16  ;;  %v988_v28 = vadd.f32 %v963_v24, %v904_v23 }
 0x407   :  { %v1094_v19 = vmul.f32 -1.442695, %v989_v18 }
 0x408   :  { %v1184_v20 = vpop.eup %1183 }
 0x409   :  { %v1186_v62 = vpop.eup %1185  ;;  %v993_v21 = vadd.f32 1.0, %v1184_v20  ;;  %1187 = vpow2.f32 %v1094_v19 }
 0x40a   :  { %v1012_v22 = vadd.f32 1.0, %v1186_v62 }
 0x40b   :  { %1189 = vrcp.f32 %v993_v21  ;;  %v1005_v35 = vand.u32 2147483648, %v993_v21  ;;  %v1003_v47 = vand.u32 2147483647, %v993_v21  ;;  %vm999_vm14 = vweird.f32 %v993_v21 }
 0x40c   :  { %1191 = vrcp.f32 %v1012_v22  ;;  %v1024_v39 = vand.u32 2147483648, %v1012_v22  ;;  %v1022_v44 = vand.u32 2147483647, %v1012_v22  ;;  %vm1018_vm15 = vweird.f32 %v1012_v22 }
 0x40d   :  { %v1006_v37 = vor.u32 1.1754944e-38, %v1005_v35  ;;  %vm1004_vm2 = vcmp.eq.f32.partialorder %v1003_v47, 8.507059e+37 }
 0x40e   :  { %v1025_v46 = vor.u32 1.1754944e-38, %v1024_v39  ;;  %vm1023_vm3 = vcmp.eq.f32.partialorder %v1022_v44, 8.507059e+37 }
 0x40f   :  { %v1188_v25 = vpop.eup %1187 }
 0x410   :  { %v1032_v26 = vadd.f32 1.0, %v1188_v25 }
 0x411   :  { %v1190_v27 = vpop.eup %1189 }
 0x412   :  { %v1192_v29 = vpop.eup %1191  ;;  %v995_v30 = vmul.f32 %v1190_v27, %v993_v21  ;;  %1193 = vrcp.f32 %v1032_v26  ;;  %vm1000_vm12 = vweird.f32 %v1190_v27  ;;  %v1044_v60 = vand.u32 2147483648, %v1032_v26 }
 0x413   :  { %v1014_v31 = vmul.f32 %v1192_v29, %v1012_v22  ;;  %1195 = vtanh.f32 %v988_v28  ;;  %vm1019_vm13 = vweird.f32 %v1192_v29  ;;  %vm1001_vm0 = vmor %vm999_vm14, %vm1000_vm12  ;;  %vm1038_vm5 = vweird.f32 %v1032_v26 }
 0x414   :  { %v996_v32 = vsub.f32 1.0, %v995_v30  ;;  %vm1020_vm1 = vmor %vm1018_vm15, %vm1019_vm13  ;;  %v1042_v51 = vand.u32 2147483647, %v1032_v26  ;;  %v1045_v38 = vor.u32 1.1754944e-38, %v1044_v60 }
 0x415   :  { %v1015_v33 = vsub.f32 1.0, %v1014_v31 }
 0x416   :  { %v997_v43 = vmul.f32 %v1190_v27, %v996_v32  ;;  %vm1043_vm7 = vcmp.eq.f32.partialorder %v1042_v51, 8.507059e+37 }
 0x417   :  { %v1016_v59 = vmul.f32 %v1192_v29, %v1015_v33 }
 0x418   :  { %v1194_v34 = vpop.eup %1193  ;;  %v998_v36 = vadd.f32 %v1190_v27, %v997_v43 }
 0x419   :  { %v1017_v40 = vadd.f32 %v1192_v29, %v1016_v59  ;;  %v1034_v49 = vmul.f32 %v1194_v34, %v1032_v26  ;;  %v1196_v48 = vpop.eup %1195  ;;  %vm1039_vm4 = vweird.f32 %v1194_v34 }
 0x41a   :  { %v1002_v55 = vsel %vm1001_vm0, %v1190_v27, %v998_v36  ;;  %vm1040_vm6 = vmor %vm1038_vm5, %vm1039_vm4 }
 0x41b   :  { %v1007_v61 = vsel %vm1004_vm2, %v1006_v37, %v1002_v55  ;;  %v1021_v54 = vsel %vm1020_vm1, %v1192_v29, %v1017_v40  ;;  %v1035_v50 = vsub.f32 1.0, %v1034_v49 }
 0x41c   :  { %v1026_v42 = vsel %vm1023_vm3, %v1025_v46, %v1021_v54  ;;  %v1049_v52 = vmul.f32 %v1196_v48, %v1007_v61 }
 0x41d   :  { %v1048_v63 = vmul.f32 %v1026_v42, %v1866_v53  ;;  %v1036_v57 = vmul.f32 %v1194_v34, %v1035_v50 }
 0x41f   :  { %v1050_v0 = vadd.f32 %v1049_v52, %v1048_v63  ;;  %v1037_v41 = vadd.f32 %v1194_v34, %v1036_v57 }
 0x421   :  { %1197 = vtanh.f32 %v1050_v0  ;;  %v1041_v56 = vsel %vm1040_vm6, %v1194_v34, %v1037_v41 }
 0x422   :  { %v1046_v53 = vsel %vm1043_vm7, %v1045_v38, %v1041_v56 }
 0x427   :  { %v1198_v45 = vpop.eup %1197 }
 0x428   :  { %v1052_v58 = vmul.f32 %v1198_v45, %v1046_v53 }
 0x42a   :  { %1054 = vst [vmem:[#allocation10 + $0x28] sm:$0xff] %v1052_v58 }
 0x42b   :  { %1069 = dma.vmem_to_hbm [thread:$0]  %s1062_s2, 768, %s1064_s30, [#allocation6], %s1371_s4, %s1371_s4, %s1372_s5  }
 0x42c   :  { %1363 = dma.done.wait [#allocation6], 768  }
 0x42d   :  { %1364 = vsyncadd [#allocation6], 4294966528 }
 0x42e   :  { %1074 = vsyncpa [#allocation5], 1 }
 0x42f   :  { %1075 = vsyncpa [#allocation8], 1 }
 0x430   :  { %1076 = vsyncpa [#allocation6], 1 }

</bundles_post_ra>
